<compile_context>
chip_gen: v5e
topology: v5e:2x2
jax: 0.10.0
libtpu: 0.0.40
codegen_flags: <defaults>
</compile_context>

<pallas_src>
import numpy as np
import jax
import jax.numpy as jnp
from jax import lax
from jax.experimental import pallas as pl
from jax.experimental.pallas import tpu as pltpu


# ----------------------------------------------------------------------------- helpers
def _centered_dft_matrix(n: int) -> np.ndarray:
    """Matrix M such that M @ x == fftshift(fft(ifftshift(x), norm='ortho')) along axis 0."""
    eye = np.eye(n)
    return np.fft.fftshift(
        np.fft.fft(np.fft.ifftshift(eye, axes=0), axis=0, norm="ortho"), axes=0
    )


def _pick_coil_block(C, H, W, Wkp, budget_bytes=40 << 20):
    """Largest divisor of C whose per-grid-step VMEM footprint fits the budget."""
    fixed = 4 * (2 * 2 * W * Wkp          # wr/wi (double-buffered by default pipeline)
                 + 2 * 2 * H * H          # hr/hi
                 + 2 * 2 * H * W)         # image re/im
    per_coil = 4 * H * (2 * 2 * W         # coil maps re/im, double-buffered
                        + 2 * 2 * Wkp     # noise re/im, double-buffered
                        + 2 * 2 * Wkp     # outputs re/im, double-buffered
                        + 2 * Wkp         # tr/ti scratch
                        + 3 * W + 3 * Wkp)  # zr/zi/zsum + p1..p3 live temporaries
    best = 1
    for cb in range(1, C + 1):
        if C % cb == 0 and fixed + cb * per_coil <= budget_bytes:
            best = cb
    return best


# ----------------------------------------------------------------------------- kernel
def _forward_kernel(sigma_ref,                  # SMEM (1,): noise sigma
                    xr_ref, xi_ref,             # image          (H, W)        (batch squeezed)
                    cr_ref, ci_ref,             # coil maps      (Cb, H, W)    coil-block
                    nr_ref, ni_ref,             # noise          (Cb, H, Wkp)  coil-block
                    wr_ref, wi_ref,             # M_W^T[:, keep] (W, Wkp)      grid-invariant
                    hr_ref, hi_ref,             # M_H            (H, H)        grid-invariant
                    yr_ref, yi_ref,             # output         (Cb, H, Wkp)  (batch squeezed)
                    tr_sc, ti_sc):              # VMEM scratch   (Cb*H, Wkp)
    f32 = jnp.float32
    Cb, H, W = cr_ref.shape
    Wkp = wr_ref.shape[1]

    xr = xr_ref[...]
    xi = xi_ref[...]
    cr = cr_ref[...]
    ci = ci_ref[...]

    # complex coil-sensitivity multiply for all Cb coils at once: Z = C * x
    zr = (cr * xr[None] - ci * xi[None]).reshape(Cb * H, W)
    zi = (cr * xi[None] + ci * xr[None]).reshape(Cb * H, W)

    # stage 1: right centered DFT restricted to the (lane-padded) sampled columns, stacked
    # over (coil, row) -> one big-M MXU matmul per real product; Gauss 3-multiply complex
    # product; ws derived in-kernel (VPU add lands in slack slots while MXU-bound).
    wr = wr_ref[...]
    wi = wi_ref[...]
    ws = wr + wi
    p1 = jnp.dot(zr, wr, preferred_element_type=f32)
    p2 = jnp.dot(zi, wi, preferred_element_type=f32)
    p3 = jnp.dot(zr + zi, ws, preferred_element_type=f32)
    tr_sc[...] = p1 - p2                 # (Cb*H, Wkp) real part of Z @ M_W^T
    ti_sc[...] = p3 - p1 - p2            # (Cb*H, Wkp) imag part

    hr = hr_ref[...]
    hi = hi_ref[...]
    hs = hr + hi
    sigma = sigma_ref[0]

    # stage 2: left centered DFT per coil; fori_loop over the VMEM scratch ref (bounds live
    # ranges, no traced-value slicing), unrolled since Cb is kept small by the block choice.
    def per_coil(c, carry):
        trc = tr_sc[pl.ds(c * H, H), :]
        tic = ti_sc[pl.ds(c * H, H), :]
        q1 = jnp.dot(hr, trc, preferred_element_type=f32)
        q2 = jnp.dot(hi, tic, preferred_element_type=f32)
        q3 = jnp.dot(hs, trc + tic, preferred_element_type=f32)
        yr_ref[c] = (q1 - q2) + sigma * nr_ref[c]
        yi_ref[c] = (q3 - q1 - q2) + sigma * ni_ref[c]
        return carry

    lax.fori_loop(0, Cb, per_coil, 0, unroll=True)


def forward_model_kspace(xr, xi, cr, ci, nr, ni, wr, wi, hr, hi, sigma):
    """Returns (yr, yi) of shape (B, C, H, Wkp): coil-weighted, noisy, column-masked k-space."""
    B, H, W = xr.shape
    C = cr.shape[0]
    Wkp = wr.shape[1]
    Cb = _pick_coil_block(C, H, W, Wkp)
    ncb = C // Cb

    smem_spec = pl.BlockSpec(memory_space=pltpu.MemorySpace.SMEM)
    img_spec = pl.BlockSpec((None, H, W), lambda cb, b: (b, 0, 0))
    coil_spec = pl.BlockSpec((Cb, H, W), lambda cb, b: (cb, 0, 0))      # resident over batch
    noise_spec = pl.BlockSpec((Cb, H, Wkp), lambda cb, b: (cb, 0, 0))   # resident over batch
    w_spec = pl.BlockSpec((W, Wkp), lambda cb, b: (0, 0))               # grid-invariant
    h_spec = pl.BlockSpec((H, H), lambda cb, b: (0, 0))                 # grid-invariant
    out_spec = pl.BlockSpec((None, Cb, H, Wkp), lambda cb, b: (b, cb, 0, 0))

    out_shape = (jax.ShapeDtypeStruct((B, C, H, Wkp), jnp.float32),
                 jax.ShapeDtypeStruct((B, C, H, Wkp), jnp.float32))

    return pl.pallas_call(
        _forward_kernel,
        out_shape=out_shape,
        grid=(ncb, B),                    # batch innermost: coil maps / noise not re-fetched
        in_specs=[smem_spec,
                  img_spec, img_spec,
                  coil_spec, coil_spec,
                  noise_spec, noise_spec,
                  w_spec, w_spec,
                  h_spec, h_spec],
        out_specs=(out_spec, out_spec),
        scratch_shapes=[pltpu.VMEM((Cb * H, Wkp), jnp.float32),
                        pltpu.VMEM((Cb * H, Wkp), jnp.float32)],
        compiler_params=pltpu.CompilerParams(
            dimension_semantics=("parallel", "parallel"),   # independent steps -> megacore
            vmem_limit_bytes=56 * 1024 * 1024),             # < 64 MiB (v7x); raise on v5e/v6e
    )(jnp.asarray([sigma], jnp.float32),
      xr, xi, cr, ci, nr, ni, wr, wi, hr, hi)


# ----------------------------------------------------------------------------- module
class ForwardModel:
    def __init__(self, noise_sigma, num_channels, img_shape, mask, mps):
        del noise_sigma  # unused in torch __init__ as well (forward takes its own sigma)
        self.num_channels = num_channels
        self.img_shape = tuple(img_shape)
        H, W = self.img_shape

        mps = np.asarray(mps)                    # (C, H, W) complex coil maps
        self.C_r = jnp.asarray(mps.real, jnp.float32)
        self.C_i = jnp.asarray(mps.imag, jnp.float32)

        # ---- mask handling: fold a column-structured (static) mask into M_W^T ----------
        m = np.asarray(mask, dtype=bool)
        m6 = m if m.ndim >= 6 else m.reshape((1,) * (6 - m.ndim) + m.shape)
        self._mask6 = m6
        col_structured = (m6.ndim == 6
                          and all(m6.shape[d] == 1 for d in (0, 1, 2, 3, 5))
                          and m6.shape[4] in (1, W))
        if col_structured:
            col = np.broadcast_to(m6, (1, 1, 1, 1, W, 1)).reshape(W)
            keep = np.flatnonzero(col)
        else:
            keep = np.arange(W)                  # general mask: full k-space + gather afterwards
        self._col_structured = col_structured
        self._n_keep = int(keep.size)

        # Lane-pad the kept-column count to a multiple of 128 so every kernel store is a
        # full-lane vst; the zero columns are trimmed in the wrapper.
        Wk = self._n_keep
        Wkp = max(128, -(-Wk // 128) * 128)
        self._Wkp = Wkp

        mh = _centered_dft_matrix(H)              # applied on the left:  (H, H)
        mwT = _centered_dft_matrix(W).T[:, keep]  # applied on the right, sampled columns only
        mwT_pad = np.zeros((W, Wkp), dtype=np.complex128)
        mwT_pad[:, :Wk] = mwT

        f32 = jnp.float32
        self._wr = jnp.asarray(mwT_pad.real, f32)
        self._wi = jnp.asarray(mwT_pad.imag, f32)
        self._hr = jnp.asarray(mh.real, f32)
        self._hi = jnp.asarray(mh.imag, f32)

        self._noise_key = jax.random.PRNGKey(20240221)
        self._ncalls = 0

    def forward(self, image, noise_sigma):
        # image: (B, H, W, 2) float32, last dim = (real, imag)
        B = image.shape[0]
        H, W = self.img_shape
        C = self.num_channels
        xr = image[..., 0]
        xi = image[..., 1]

        # Fresh N(0,1) noise every call (torch: self.rng.normal_()); one realization per
        # (coil, row, kept column, re/im) is generated once and broadcast over the batch
        # dimension inside the kernel, matching torch's [1, C, H, W, 2] broadcast.
        # TODO(synk): torch's exact torch.Generator bit-stream is not reproducible on TPU;
        # the N(0,1) statistics and batch-broadcast semantics are matched instead.
        key = jax.random.fold_in(self._noise_key, self._ncalls)
        self._ncalls += 1
        noise = jax.random.normal(key, (2, C, H, self._Wkp), dtype=jnp.float32)

        yr, yi = forward_model_kspace(xr, xi, self.C_r, self.C_i,
                                      noise[0], noise[1],
                                      self._wr, self._wi, self._hr, self._hi,
                                      float(noise_sigma))
        Wk = self._n_keep
        yr = yr[..., :Wk]                         # trim lane padding
        yi = yi[..., :Wk]
        # TODO(synk): the real/imag interleave is still a post-kernel stack; folding it into
        # the kernel store needs an even/odd lane interleave (or u32 packing) and is skipped.
        y = jnp.stack([yr, yi], axis=-1)          # (B, C, H, Wk, 2)
        if self._col_structured:
            # column mask is already folded into M_W^T; this flattening matches torch's
            # row-major boolean indexing of the [1, B, C, H, W, 2] broadcast view.
            return y.reshape(B, -1)
        # general-mask fallback: full k-space computed, static gather (torch semantics)
        y6 = y[None]                              # (1, B, C, H, W, 2)
        mask_exp = np.broadcast_to(self._mask6, y6.shape)
        flat_idx = np.flatnonzero(mask_exp)
        return jnp.take(y6.reshape(-1), jnp.asarray(flat_idx)).reshape(B, -1)


# ----------------------------------------------------------------------------- main
if __name__ == "__main__":
    B, C, H, W = 2, 4, 16, 16
    sigma = 0.01

    key = jax.random.PRNGKey(0)
    k1, k2, k3 = jax.random.split(key, 3)
    image = jax.random.normal(k1, (B, H, W, 2), dtype=jnp.float32)
    mps = (np.asarray(jax.random.normal(k2, (C, H, W), dtype=jnp.float32))
           + 1j * np.asarray(jax.random.normal(k3, (C, H, W), dtype=jnp.float32)))

    # k-space column undersampling mask, broadcastable to [1, B, C, H, W, 2]
    col_mask = np.zeros((W,), dtype=bool)
    col_mask[::2] = True
    col_mask[W // 2 - 2: W // 2 + 2] = True      # fully-sampled center
    mask = col_mask.reshape(1, 1, 1, 1, W, 1)

    model = ForwardModel(sigma, C, (H, W), mask, mps)

    # --- noise-free pass: exact check against numpy centered orthonormal FFT2 ----------
    out0 = jax.block_until_ready(model.forward(image, 0.0))

    x_np = np.asarray(image)
    xc = x_np[..., 0] + 1j * x_np[..., 1]                        # (B, H, W)
    z = mps[None] * xc[:, None]                                  # (B, C, H, W)
    kspace = np.fft.fftshift(
        np.fft.fft2(np.fft.ifftshift(z, axes=(-2, -1)), axes=(-2, -1), norm="ortho"),
        axes=(-2, -1))
    y_ref = np.stack([kspace.real, kspace.imag], axis=-1)[None]  # (1, B, C, H, W, 2)
    ref0 = y_ref.reshape(-1)[np.flatnonzero(np.broadcast_to(mask, y_ref.shape))].reshape(B, -1)

    np.testing.assert_allclose(np.asarray(out0), ref0, rtol=1e-4, atol=1e-4)
    n_keep = int(col_mask.sum())
    assert out0.shape == (B, C * H * n_keep * 2)

    # --- noisy pass: validate noise statistics + torch batch-broadcast semantics --------
    out1 = jax.block_until_ready(model.forward(image, sigma))
    noise = (np.asarray(out1) - np.asarray(out0)) / sigma
    assert np.all(np.isfinite(noise))
    # torch adds a [1, C, H, W, 2] noise tensor -> identical realization for every batch element
    np.testing.assert_allclose(noise[0], noise[1], rtol=1e-3, atol=1e-3)
    assert abs(float(noise.mean())) < 0.25
    assert abs(float(noise.std()) - 1.0) < 0.25

    # fresh noise on the next call
    out2 = jax.block_until_ready(model.forward(image, sigma))
    assert not np.allclose(np.asarray(out2), np.asarray(out1))

    print("KERNEL_OK")
</pallas_src>

<mosaic_0001>
module attributes {stable_mosaic.version = 11 : i64} {
  func.func @_forward_kernel(%arg0: i32, %arg1: i32, %arg2: memref<1xf32, #tpu.memory_space<smem>>, %arg3: memref<1x16x16xf32, #tpu.memory_space<vmem>>, %arg4: memref<1x16x16xf32, #tpu.memory_space<vmem>>, %arg5: memref<4x16x16xf32, #tpu.memory_space<vmem>>, %arg6: memref<4x16x16xf32, #tpu.memory_space<vmem>>, %arg7: memref<4x16x128xf32, #tpu.memory_space<vmem>>, %arg8: memref<4x16x128xf32, #tpu.memory_space<vmem>>, %arg9: memref<16x128xf32, #tpu.memory_space<vmem>>, %arg10: memref<16x128xf32, #tpu.memory_space<vmem>>, %arg11: memref<16x16xf32, #tpu.memory_space<vmem>>, %arg12: memref<16x16xf32, #tpu.memory_space<vmem>>, %arg13: memref<1x4x16x128xf32, #tpu.memory_space<vmem>>, %arg14: memref<1x4x16x128xf32, #tpu.memory_space<vmem>>, %arg15: memref<64x128xf32, #tpu.memory_space<vmem>>, %arg16: memref<64x128xf32, #tpu.memory_space<vmem>>) attributes {dimension_semantics = [#tpu.dimension_semantics<parallel>, #tpu.dimension_semantics<parallel>], iteration_bounds = array<i64: 1, 2>, scalar_prefetch = 0 : i64, scratch_operands = 2 : i64, tpu.core_type = #tpu.core_type<tc>, window_params = [{transform_indices = @transform_0, window_bounds = array<i64: 1>}, {transform_indices = @transform_1, window_bounds = array<i64: 1, 16, 16>}, {transform_indices = @transform_2, window_bounds = array<i64: 1, 16, 16>}, {transform_indices = @transform_3, window_bounds = array<i64: 4, 16, 16>}, {transform_indices = @transform_4, window_bounds = array<i64: 4, 16, 16>}, {transform_indices = @transform_5, window_bounds = array<i64: 4, 16, 128>}, {transform_indices = @transform_6, window_bounds = array<i64: 4, 16, 128>}, {pipeline_mode = #tpu.pipeline_mode<synchronous>, transform_indices = @transform_7, window_bounds = array<i64: 16, 128>}, {pipeline_mode = #tpu.pipeline_mode<synchronous>, transform_indices = @transform_8, window_bounds = array<i64: 16, 128>}, {pipeline_mode = #tpu.pipeline_mode<synchronous>, transform_indices = @transform_9, window_bounds = array<i64: 16, 16>}, {pipeline_mode = #tpu.pipeline_mode<synchronous>, transform_indices = @transform_10, window_bounds = array<i64: 16, 16>}, {transform_indices = @transform_11, window_bounds = array<i64: 1, 4, 16, 128>}, {transform_indices = @transform_12, window_bounds = array<i64: 1, 4, 16, 128>}]} {
    %c0 = arith.constant 0 : index
    %c0_0 = arith.constant 0 : index
    %c0_1 = arith.constant 0 : index
    %0 = vector.load %arg3[%c0, %c0_0, %c0_1] : memref<1x16x16xf32, #tpu.memory_space<vmem>>, vector<1x16x16xf32>
    %1 = vector.shape_cast %0 : vector<1x16x16xf32> to vector<16x16xf32>
    %c0_2 = arith.constant 0 : index
    %c0_3 = arith.constant 0 : index
    %c0_4 = arith.constant 0 : index
    %2 = vector.load %arg4[%c0_2, %c0_3, %c0_4] : memref<1x16x16xf32, #tpu.memory_space<vmem>>, vector<1x16x16xf32>
    %3 = vector.shape_cast %2 : vector<1x16x16xf32> to vector<16x16xf32>
    %c0_5 = arith.constant 0 : index
    %c0_6 = arith.constant 0 : index
    %c0_7 = arith.constant 0 : index
    %4 = vector.load %arg5[%c0_5, %c0_6, %c0_7] : memref<4x16x16xf32, #tpu.memory_space<vmem>>, vector<4x16x16xf32>
    %c0_8 = arith.constant 0 : index
    %c0_9 = arith.constant 0 : index
    %c0_10 = arith.constant 0 : index
    %5 = vector.load %arg6[%c0_8, %c0_9, %c0_10] : memref<4x16x16xf32, #tpu.memory_space<vmem>>, vector<4x16x16xf32>
    %6 = vector.shape_cast %1 : vector<16x16xf32> to vector<1x16x16xf32>
    %7 = vector.broadcast %6 : vector<1x16x16xf32> to vector<4x16x16xf32>
    %8 = arith.mulf %4, %7 : vector<4x16x16xf32>
    %9 = vector.shape_cast %3 : vector<16x16xf32> to vector<1x16x16xf32>
    %10 = vector.broadcast %9 : vector<1x16x16xf32> to vector<4x16x16xf32>
    %11 = arith.mulf %5, %10 : vector<4x16x16xf32>
    %12 = arith.subf %8, %11 : vector<4x16x16xf32>
    %13 = vector.shape_cast %12 : vector<4x16x16xf32> to vector<64x16xf32>
    %14 = vector.shape_cast %3 : vector<16x16xf32> to vector<1x16x16xf32>
    %15 = vector.broadcast %14 : vector<1x16x16xf32> to vector<4x16x16xf32>
    %16 = arith.mulf %4, %15 : vector<4x16x16xf32>
    %17 = vector.shape_cast %1 : vector<16x16xf32> to vector<1x16x16xf32>
    %18 = vector.broadcast %17 : vector<1x16x16xf32> to vector<4x16x16xf32>
    %19 = arith.mulf %5, %18 : vector<4x16x16xf32>
    %20 = arith.addf %16, %19 : vector<4x16x16xf32>
    %21 = vector.shape_cast %20 : vector<4x16x16xf32> to vector<64x16xf32>
    %c0_11 = arith.constant 0 : index
    %c0_12 = arith.constant 0 : index
    %22 = vector.load %arg9[%c0_11, %c0_12] : memref<16x128xf32, #tpu.memory_space<vmem>>, vector<16x128xf32>
    %c0_13 = arith.constant 0 : index
    %c0_14 = arith.constant 0 : index
    %23 = vector.load %arg10[%c0_13, %c0_14] : memref<16x128xf32, #tpu.memory_space<vmem>>, vector<16x128xf32>
    %24 = arith.addf %22, %23 : vector<16x128xf32>
    %cst = arith.constant dense<0.000000e+00> : vector<64x128xf32>
    %25 = tpu.matmul %13, %22, %cst {dimension_numbers = #tpu.dot_dimension_numbers<[1], [0], [0], [1], [0, 0, 1, 1], [], []>} : vector<64x16xf32>, vector<16x128xf32>, vector<64x128xf32> -> vector<64x128xf32>
    %cst_15 = arith.constant dense<0.000000e+00> : vector<64x128xf32>
    %26 = tpu.matmul %21, %23, %cst_15 {dimension_numbers = #tpu.dot_dimension_numbers<[1], [0], [0], [1], [0, 0, 1, 1], [], []>} : vector<64x16xf32>, vector<16x128xf32>, vector<64x128xf32> -> vector<64x128xf32>
    %27 = arith.addf %13, %21 : vector<64x16xf32>
    %cst_16 = arith.constant dense<0.000000e+00> : vector<64x128xf32>
    %28 = tpu.matmul %27, %24, %cst_16 {dimension_numbers = #tpu.dot_dimension_numbers<[1], [0], [0], [1], [0, 0, 1, 1], [], []>} : vector<64x16xf32>, vector<16x128xf32>, vector<64x128xf32> -> vector<64x128xf32>
    %29 = arith.subf %25, %26 : vector<64x128xf32>
    %c0_17 = arith.constant 0 : index
    %c0_18 = arith.constant 0 : index
    %30 = vector.load %arg15[%c0_17, %c0_18] : memref<64x128xf32, #tpu.memory_space<vmem>>, vector<64x128xf32>
    tpu.vector_store %arg15[%c0_17, %c0_18], %29 {strides = array<i32>} : memref<64x128xf32, #tpu.memory_space<vmem>>, vector<64x128xf32>,
    %31 = arith.subf %28, %25 : vector<64x128xf32>
    %32 = arith.subf %31, %26 : vector<64x128xf32>
    %c0_19 = arith.constant 0 : index
    %c0_20 = arith.constant 0 : index
    %33 = vector.load %arg16[%c0_19, %c0_20] : memref<64x128xf32, #tpu.memory_space<vmem>>, vector<64x128xf32>
    tpu.vector_store %arg16[%c0_19, %c0_20], %32 {strides = array<i32>} : memref<64x128xf32, #tpu.memory_space<vmem>>, vector<64x128xf32>,
    %c0_21 = arith.constant 0 : index
    %c0_22 = arith.constant 0 : index
    %34 = vector.load %arg11[%c0_21, %c0_22] : memref<16x16xf32, #tpu.memory_space<vmem>>, vector<16x16xf32>
    %c0_23 = arith.constant 0 : index
    %c0_24 = arith.constant 0 : index
    %35 = vector.load %arg12[%c0_23, %c0_24] : memref<16x16xf32, #tpu.memory_space<vmem>>, vector<16x16xf32>
    %36 = arith.addf %34, %35 : vector<16x16xf32>
    %c0_25 = arith.constant 0 : index
    %37 = memref.load %arg2[%c0_25] : memref<1xf32, #tpu.memory_space<smem>>
    %c0_i32 = arith.constant 0 : i32
    %c16_i32 = arith.constant 16 : i32
    %38 = arith.muli %c0_i32, %c16_i32 : i32
    %39 = arith.index_cast %38 : i32 to index
    %c0_26 = arith.constant 0 : index
    %40 = vector.load %arg15[%39, %c0_26] : memref<64x128xf32, #tpu.memory_space<vmem>>, vector<16x128xf32>
    %c16_i32_27 = arith.constant 16 : i32
    %41 = arith.muli %c0_i32, %c16_i32_27 : i32
    %42 = arith.index_cast %41 : i32 to index
    %c0_28 = arith.constant 0 : index
    %43 = vector.load %arg16[%42, %c0_28] : memref<64x128xf32, #tpu.memory_space<vmem>>, vector<16x128xf32>
    %cst_29 = arith.constant dense<0.000000e+00> : vector<16x128xf32>
    %44 = tpu.matmul %34, %40, %cst_29 {dimension_numbers = #tpu.dot_dimension_numbers<[1], [0], [0], [1], [0, 0, 1, 1], [], []>} : vector<16x16xf32>, vector<16x128xf32>, vector<16x128xf32> -> vector<16x128xf32>
    %cst_30 = arith.constant dense<0.000000e+00> : vector<16x128xf32>
    %45 = tpu.matmul %35, %43, %cst_30 {dimension_numbers = #tpu.dot_dimension_numbers<[1], [0], [0], [1], [0, 0, 1, 1], [], []>} : vector<16x16xf32>, vector<16x128xf32>, vector<16x128xf32> -> vector<16x128xf32>
    %46 = arith.addf %40, %43 : vector<16x128xf32>
    %cst_31 = arith.constant dense<0.000000e+00> : vector<16x128xf32>
    %47 = tpu.matmul %36, %46, %cst_31 {dimension_numbers = #tpu.dot_dimension_numbers<[1], [0], [0], [1], [0, 0, 1, 1], [], []>} : vector<16x16xf32>, vector<16x128xf32>, vector<16x128xf32> -> vector<16x128xf32>
    %48 = arith.subf %44, %45 : vector<16x128xf32>
    %49 = arith.index_cast %c0_i32 : i32 to index
    %c0_32 = arith.constant 0 : index
    %c0_33 = arith.constant 0 : index
    %50 = vector.load %arg7[%49, %c0_32, %c0_33] : memref<4x16x128xf32, #tpu.memory_space<vmem>>, vector<1x16x128xf32>
    %51 = vector.shape_cast %50 : vector<1x16x128xf32> to vector<16x128xf32>
    %52 = vector.broadcast %37 : f32 to vector<16x128xf32>
    %53 = arith.mulf %52, %51 : vector<16x128xf32>
    %54 = arith.addf %48, %53 : vector<16x128xf32>
    %c0_34 = arith.constant 0 : index
    %55 = arith.index_cast %c0_i32 : i32 to index
    %c0_35 = arith.constant 0 : index
    %c0_36 = arith.constant 0 : index
    %56 = vector.load %arg13[%c0_34, %55, %c0_35, %c0_36] : memref<1x4x16x128xf32, #tpu.memory_space<vmem>>, vector<1x1x16x128xf32>
    %57 = vector.shape_cast %56 : vector<1x1x16x128xf32> to vector<16x128xf32>
    %58 = vector.shape_cast %54 : vector<16x128xf32> to vector<1x1x16x128xf32>
    tpu.vector_store %arg13[%c0_34, %55, %c0_35, %c0_36], %58 {strides = array<i32>} : memref<1x4x16x128xf32, #tpu.memory_space<vmem>>, vector<1x1x16x128xf32>,
    %59 = arith.subf %47, %44 : vector<16x128xf32>
    %60 = arith.subf %59, %45 : vector<16x128xf32>
    %61 = arith.index_cast %c0_i32 : i32 to index
    %c0_37 = arith.constant 0 : index
    %c0_38 = arith.constant 0 : index
    %62 = vector.load %arg8[%61, %c0_37, %c0_38] : memref<4x16x128xf32, #tpu.memory_space<vmem>>, vector<1x16x128xf32>
    %63 = vector.shape_cast %62 : vector<1x16x128xf32> to vector<16x128xf32>
    %64 = vector.broadcast %37 : f32 to vector<16x128xf32>
    %65 = arith.mulf %64, %63 : vector<16x128xf32>
    %66 = arith.addf %60, %65 : vector<16x128xf32>
    %c0_39 = arith.constant 0 : index
    %67 = arith.index_cast %c0_i32 : i32 to index
    %c0_40 = arith.constant 0 : index
    %c0_41 = arith.constant 0 : index
    %68 = vector.load %arg14[%c0_39, %67, %c0_40, %c0_41] : memref<1x4x16x128xf32, #tpu.memory_space<vmem>>, vector<1x1x16x128xf32>
    %69 = vector.shape_cast %68 : vector<1x1x16x128xf32> to vector<16x128xf32>
    %70 = vector.shape_cast %66 : vector<16x128xf32> to vector<1x1x16x128xf32>
    tpu.vector_store %arg14[%c0_39, %67, %c0_40, %c0_41], %70 {strides = array<i32>} : memref<1x4x16x128xf32, #tpu.memory_space<vmem>>, vector<1x1x16x128xf32>,
    %c1_i32 = arith.constant 1 : i32
    %c16_i32_42 = arith.constant 16 : i32
    %71 = arith.muli %c1_i32, %c16_i32_42 : i32
    %72 = arith.index_cast %71 : i32 to index
    %c0_43 = arith.constant 0 : index
    %73 = vector.load %arg15[%72, %c0_43] : memref<64x128xf32, #tpu.memory_space<vmem>>, vector<16x128xf32>
    %c16_i32_44 = arith.constant 16 : i32
    %74 = arith.muli %c1_i32, %c16_i32_44 : i32
    %75 = arith.index_cast %74 : i32 to index
    %c0_45 = arith.constant 0 : index
    %76 = vector.load %arg16[%75, %c0_45] : memref<64x128xf32, #tpu.memory_space<vmem>>, vector<16x128xf32>
    %cst_46 = arith.constant dense<0.000000e+00> : vector<16x128xf32>
    %77 = tpu.matmul %34, %73, %cst_46 {dimension_numbers = #tpu.dot_dimension_numbers<[1], [0], [0], [1], [0, 0, 1, 1], [], []>} : vector<16x16xf32>, vector<16x128xf32>, vector<16x128xf32> -> vector<16x128xf32>
    %cst_47 = arith.constant dense<0.000000e+00> : vector<16x128xf32>
    %78 = tpu.matmul %35, %76, %cst_47 {dimension_numbers = #tpu.dot_dimension_numbers<[1], [0], [0], [1], [0, 0, 1, 1], [], []>} : vector<16x16xf32>, vector<16x128xf32>, vector<16x128xf32> -> vector<16x128xf32>
    %79 = arith.addf %73, %76 : vector<16x128xf32>
    %cst_48 = arith.constant dense<0.000000e+00> : vector<16x128xf32>
    %80 = tpu.matmul %36, %79, %cst_48 {dimension_numbers = #tpu.dot_dimension_numbers<[1], [0], [0], [1], [0, 0, 1, 1], [], []>} : vector<16x16xf32>, vector<16x128xf32>, vector<16x128xf32> -> vector<16x128xf32>
    %81 = arith.subf %77, %78 : vector<16x128xf32>
    %82 = arith.index_cast %c1_i32 : i32 to index
    %c0_49 = arith.constant 0 : index
    %c0_50 = arith.constant 0 : index
    %83 = vector.load %arg7[%82, %c0_49, %c0_50] : memref<4x16x128xf32, #tpu.memory_space<vmem>>, vector<1x16x128xf32>
    %84 = vector.shape_cast %83 : vector<1x16x128xf32> to vector<16x128xf32>
    %85 = vector.broadcast %37 : f32 to vector<16x128xf32>
    %86 = arith.mulf %85, %84 : vector<16x128xf32>
    %87 = arith.addf %81, %86 : vector<16x128xf32>
    %c0_51 = arith.constant 0 : index
    %88 = arith.index_cast %c1_i32 : i32 to index
    %c0_52 = arith.constant 0 : index
    %c0_53 = arith.constant 0 : index
    %89 = vector.load %arg13[%c0_51, %88, %c0_52, %c0_53] : memref<1x4x16x128xf32, #tpu.memory_space<vmem>>, vector<1x1x16x128xf32>
    %90 = vector.shape_cast %89 : vector<1x1x16x128xf32> to vector<16x128xf32>
    %91 = vector.shape_cast %87 : vector<16x128xf32> to vector<1x1x16x128xf32>
    tpu.vector_store %arg13[%c0_51, %88, %c0_52, %c0_53], %91 {strides = array<i32>} : memref<1x4x16x128xf32, #tpu.memory_space<vmem>>, vector<1x1x16x128xf32>,
    %92 = arith.subf %80, %77 : vector<16x128xf32>
    %93 = arith.subf %92, %78 : vector<16x128xf32>
    %94 = arith.index_cast %c1_i32 : i32 to index
    %c0_54 = arith.constant 0 : index
    %c0_55 = arith.constant 0 : index
    %95 = vector.load %arg8[%94, %c0_54, %c0_55] : memref<4x16x128xf32, #tpu.memory_space<vmem>>, vector<1x16x128xf32>
    %96 = vector.shape_cast %95 : vector<1x16x128xf32> to vector<16x128xf32>
    %97 = vector.broadcast %37 : f32 to vector<16x128xf32>
    %98 = arith.mulf %97, %96 : vector<16x128xf32>
    %99 = arith.addf %93, %98 : vector<16x128xf32>
    %c0_56 = arith.constant 0 : index
    %100 = arith.index_cast %c1_i32 : i32 to index
    %c0_57 = arith.constant 0 : index
    %c0_58 = arith.constant 0 : index
    %101 = vector.load %arg14[%c0_56, %100, %c0_57, %c0_58] : memref<1x4x16x128xf32, #tpu.memory_space<vmem>>, vector<1x1x16x128xf32>
    %102 = vector.shape_cast %101 : vector<1x1x16x128xf32> to vector<16x128xf32>
    %103 = vector.shape_cast %99 : vector<16x128xf32> to vector<1x1x16x128xf32>
    tpu.vector_store %arg14[%c0_56, %100, %c0_57, %c0_58], %103 {strides = array<i32>} : memref<1x4x16x128xf32, #tpu.memory_space<vmem>>, vector<1x1x16x128xf32>,
    %c2_i32 = arith.constant 2 : i32
    %c16_i32_59 = arith.constant 16 : i32
    %104 = arith.muli %c2_i32, %c16_i32_59 : i32
    %105 = arith.index_cast %104 : i32 to index
    %c0_60 = arith.constant 0 : index
    %106 = vector.load %arg15[%105, %c0_60] : memref<64x128xf32, #tpu.memory_space<vmem>>, vector<16x128xf32>
    %c16_i32_61 = arith.constant 16 : i32
    %107 = arith.muli %c2_i32, %c16_i32_61 : i32
    %108 = arith.index_cast %107 : i32 to index
    %c0_62 = arith.constant 0 : index
    %109 = vector.load %arg16[%108, %c0_62] : memref<64x128xf32, #tpu.memory_space<vmem>>, vector<16x128xf32>
    %cst_63 = arith.constant dense<0.000000e+00> : vector<16x128xf32>
    %110 = tpu.matmul %34, %106, %cst_63 {dimension_numbers = #tpu.dot_dimension_numbers<[1], [0], [0], [1], [0, 0, 1, 1], [], []>} : vector<16x16xf32>, vector<16x128xf32>, vector<16x128xf32> -> vector<16x128xf32>
    %cst_64 = arith.constant dense<0.000000e+00> : vector<16x128xf32>
    %111 = tpu.matmul %35, %109, %cst_64 {dimension_numbers = #tpu.dot_dimension_numbers<[1], [0], [0], [1], [0, 0, 1, 1], [], []>} : vector<16x16xf32>, vector<16x128xf32>, vector<16x128xf32> -> vector<16x128xf32>
    %112 = arith.addf %106, %109 : vector<16x128xf32>
    %cst_65 = arith.constant dense<0.000000e+00> : vector<16x128xf32>
    %113 = tpu.matmul %36, %112, %cst_65 {dimension_numbers = #tpu.dot_dimension_numbers<[1], [0], [0], [1], [0, 0, 1, 1], [], []>} : vector<16x16xf32>, vector<16x128xf32>, vector<16x128xf32> -> vector<16x128xf32>
    %114 = arith.subf %110, %111 : vector<16x128xf32>
    %115 = arith.index_cast %c2_i32 : i32 to index
    %c0_66 = arith.constant 0 : index
    %c0_67 = arith.constant 0 : index
    %116 = vector.load %arg7[%115, %c0_66, %c0_67] : memref<4x16x128xf32, #tpu.memory_space<vmem>>, vector<1x16x128xf32>
    %117 = vector.shape_cast %116 : vector<1x16x128xf32> to vector<16x128xf32>
    %118 = vector.broadcast %37 : f32 to vector<16x128xf32>
    %119 = arith.mulf %118, %117 : vector<16x128xf32>
    %120 = arith.addf %114, %119 : vector<16x128xf32>
    %c0_68 = arith.constant 0 : index
    %121 = arith.index_cast %c2_i32 : i32 to index
    %c0_69 = arith.constant 0 : index
    %c0_70 = arith.constant 0 : index
    %122 = vector.load %arg13[%c0_68, %121, %c0_69, %c0_70] : memref<1x4x16x128xf32, #tpu.memory_space<vmem>>, vector<1x1x16x128xf32>
    %123 = vector.shape_cast %122 : vector<1x1x16x128xf32> to vector<16x128xf32>
    %124 = vector.shape_cast %120 : vector<16x128xf32> to vector<1x1x16x128xf32>
    tpu.vector_store %arg13[%c0_68, %121, %c0_69, %c0_70], %124 {strides = array<i32>} : memref<1x4x16x128xf32, #tpu.memory_space<vmem>>, vector<1x1x16x128xf32>,
    %125 = arith.subf %113, %110 : vector<16x128xf32>
    %126 = arith.subf %125, %111 : vector<16x128xf32>
    %127 = arith.index_cast %c2_i32 : i32 to index
    %c0_71 = arith.constant 0 : index
    %c0_72 = arith.constant 0 : index
    %128 = vector.load %arg8[%127, %c0_71, %c0_72] : memref<4x16x128xf32, #tpu.memory_space<vmem>>, vector<1x16x128xf32>
    %129 = vector.shape_cast %128 : vector<1x16x128xf32> to vector<16x128xf32>
    %130 = vector.broadcast %37 : f32 to vector<16x128xf32>
    %131 = arith.mulf %130, %129 : vector<16x128xf32>
    %132 = arith.addf %126, %131 : vector<16x128xf32>
    %c0_73 = arith.constant 0 : index
    %133 = arith.index_cast %c2_i32 : i32 to index
    %c0_74 = arith.constant 0 : index
    %c0_75 = arith.constant 0 : index
    %134 = vector.load %arg14[%c0_73, %133, %c0_74, %c0_75] : memref<1x4x16x128xf32, #tpu.memory_space<vmem>>, vector<1x1x16x128xf32>
    %135 = vector.shape_cast %134 : vector<1x1x16x128xf32> to vector<16x128xf32>
    %136 = vector.shape_cast %132 : vector<16x128xf32> to vector<1x1x16x128xf32>
    tpu.vector_store %arg14[%c0_73, %133, %c0_74, %c0_75], %136 {strides = array<i32>} : memref<1x4x16x128xf32, #tpu.memory_space<vmem>>, vector<1x1x16x128xf32>,
    %c3_i32 = arith.constant 3 : i32
    %c16_i32_76 = arith.constant 16 : i32
    %137 = arith.muli %c3_i32, %c16_i32_76 : i32
    %138 = arith.index_cast %137 : i32 to index
    %c0_77 = arith.constant 0 : index
    %139 = vector.load %arg15[%138, %c0_77] : memref<64x128xf32, #tpu.memory_space<vmem>>, vector<16x128xf32>
    %c16_i32_78 = arith.constant 16 : i32
    %140 = arith.muli %c3_i32, %c16_i32_78 : i32
    %141 = arith.index_cast %140 : i32 to index
    %c0_79 = arith.constant 0 : index
    %142 = vector.load %arg16[%141, %c0_79] : memref<64x128xf32, #tpu.memory_space<vmem>>, vector<16x128xf32>
    %cst_80 = arith.constant dense<0.000000e+00> : vector<16x128xf32>
    %143 = tpu.matmul %34, %139, %cst_80 {dimension_numbers = #tpu.dot_dimension_numbers<[1], [0], [0], [1], [0, 0, 1, 1], [], []>} : vector<16x16xf32>, vector<16x128xf32>, vector<16x128xf32> -> vector<16x128xf32>
    %cst_81 = arith.constant dense<0.000000e+00> : vector<16x128xf32>
    %144 = tpu.matmul %35, %142, %cst_81 {dimension_numbers = #tpu.dot_dimension_numbers<[1], [0], [0], [1], [0, 0, 1, 1], [], []>} : vector<16x16xf32>, vector<16x128xf32>, vector<16x128xf32> -> vector<16x128xf32>
    %145 = arith.addf %139, %142 : vector<16x128xf32>
    %cst_82 = arith.constant dense<0.000000e+00> : vector<16x128xf32>
    %146 = tpu.matmul %36, %145, %cst_82 {dimension_numbers = #tpu.dot_dimension_numbers<[1], [0], [0], [1], [0, 0, 1, 1], [], []>} : vector<16x16xf32>, vector<16x128xf32>, vector<16x128xf32> -> vector<16x128xf32>
    %147 = arith.subf %143, %144 : vector<16x128xf32>
    %148 = arith.index_cast %c3_i32 : i32 to index
    %c0_83 = arith.constant 0 : index
    %c0_84 = arith.constant 0 : index
    %149 = vector.load %arg7[%148, %c0_83, %c0_84] : memref<4x16x128xf32, #tpu.memory_space<vmem>>, vector<1x16x128xf32>
    %150 = vector.shape_cast %149 : vector<1x16x128xf32> to vector<16x128xf32>
    %151 = vector.broadcast %37 : f32 to vector<16x128xf32>
    %152 = arith.mulf %151, %150 : vector<16x128xf32>
    %153 = arith.addf %147, %152 : vector<16x128xf32>
    %c0_85 = arith.constant 0 : index
    %154 = arith.index_cast %c3_i32 : i32 to index
    %c0_86 = arith.constant 0 : index
    %c0_87 = arith.constant 0 : index
    %155 = vector.load %arg13[%c0_85, %154, %c0_86, %c0_87] : memref<1x4x16x128xf32, #tpu.memory_space<vmem>>, vector<1x1x16x128xf32>
    %156 = vector.shape_cast %155 : vector<1x1x16x128xf32> to vector<16x128xf32>
    %157 = vector.shape_cast %153 : vector<16x128xf32> to vector<1x1x16x128xf32>
    tpu.vector_store %arg13[%c0_85, %154, %c0_86, %c0_87], %157 {strides = array<i32>} : memref<1x4x16x128xf32, #tpu.memory_space<vmem>>, vector<1x1x16x128xf32>,
    %158 = arith.subf %146, %143 : vector<16x128xf32>
    %159 = arith.subf %158, %144 : vector<16x128xf32>
    %160 = arith.index_cast %c3_i32 : i32 to index
    %c0_88 = arith.constant 0 : index
    %c0_89 = arith.constant 0 : index
    %161 = vector.load %arg8[%160, %c0_88, %c0_89] : memref<4x16x128xf32, #tpu.memory_space<vmem>>, vector<1x16x128xf32>
    %162 = vector.shape_cast %161 : vector<1x16x128xf32> to vector<16x128xf32>
    %163 = vector.broadcast %37 : f32 to vector<16x128xf32>
    %164 = arith.mulf %163, %162 : vector<16x128xf32>
    %165 = arith.addf %159, %164 : vector<16x128xf32>
    %c0_90 = arith.constant 0 : index
    %166 = arith.index_cast %c3_i32 : i32 to index
    %c0_91 = arith.constant 0 : index
    %c0_92 = arith.constant 0 : index
    %167 = vector.load %arg14[%c0_90, %166, %c0_91, %c0_92] : memref<1x4x16x128xf32, #tpu.memory_space<vmem>>, vector<1x1x16x128xf32>
    %168 = vector.shape_cast %167 : vector<1x1x16x128xf32> to vector<16x128xf32>
    %169 = vector.shape_cast %165 : vector<16x128xf32> to vector<1x1x16x128xf32>
    tpu.vector_store %arg14[%c0_90, %166, %c0_91, %c0_92], %169 {strides = array<i32>} : memref<1x4x16x128xf32, #tpu.memory_space<vmem>>, vector<1x1x16x128xf32>,
    %c4_i32 = arith.constant 4 : i32
    return
  }
  func.func @transform_0(%arg0: i32, %arg1: i32) -> i32 {
    %c0_i32 = arith.constant 0 : i32
    %c0_i32_0 = arith.constant 0 : i32
    return %c0_i32 : i32
  }
  func.func @transform_1(%arg0: i32, %arg1: i32) -> (i32, i32, i32) {
    %c0_i32 = arith.constant 0 : i32
    %c0_i32_0 = arith.constant 0 : i32
    %c0_i32_1 = arith.constant 0 : i32
    return %arg1, %c0_i32, %c0_i32_0 : i32, i32, i32
  }
  func.func @transform_2(%arg0: i32, %arg1: i32) -> (i32, i32, i32) {
    %c0_i32 = arith.constant 0 : i32
    %c0_i32_0 = arith.constant 0 : i32
    %c0_i32_1 = arith.constant 0 : i32
    return %arg1, %c0_i32, %c0_i32_0 : i32, i32, i32
  }
  func.func @transform_3(%arg0: i32, %arg1: i32) -> (i32, i32, i32) {
    %c0_i32 = arith.constant 0 : i32
    %c0_i32_0 = arith.constant 0 : i32
    %c0_i32_1 = arith.constant 0 : i32
    return %arg0, %c0_i32, %c0_i32_0 : i32, i32, i32
  }
  func.func @transform_4(%arg0: i32, %arg1: i32) -> (i32, i32, i32) {
    %c0_i32 = arith.constant 0 : i32
    %c0_i32_0 = arith.constant 0 : i32
    %c0_i32_1 = arith.constant 0 : i32
    return %arg0, %c0_i32, %c0_i32_0 : i32, i32, i32
  }
  func.func @transform_5(%arg0: i32, %arg1: i32) -> (i32, i32, i32) {
    %c0_i32 = arith.constant 0 : i32
    %c0_i32_0 = arith.constant 0 : i32
    %c0_i32_1 = arith.constant 0 : i32
    return %arg0, %c0_i32, %c0_i32_0 : i32, i32, i32
  }
  func.func @transform_6(%arg0: i32, %arg1: i32) -> (i32, i32, i32) {
    %c0_i32 = arith.constant 0 : i32
    %c0_i32_0 = arith.constant 0 : i32
    %c0_i32_1 = arith.constant 0 : i32
    return %arg0, %c0_i32, %c0_i32_0 : i32, i32, i32
  }
  func.func @transform_7(%arg0: i32, %arg1: i32) -> (i32, i32) {
    %c0_i32 = arith.constant 0 : i32
    %c0_i32_0 = arith.constant 0 : i32
    %c0_i32_1 = arith.constant 0 : i32
    return %c0_i32, %c0_i32_0 : i32, i32
  }
  func.func @transform_8(%arg0: i32, %arg1: i32) -> (i32, i32) {
    %c0_i32 = arith.constant 0 : i32
    %c0_i32_0 = arith.constant 0 : i32
    %c0_i32_1 = arith.constant 0 : i32
    return %c0_i32, %c0_i32_0 : i32, i32
  }
  func.func @transform_9(%arg0: i32, %arg1: i32) -> (i32, i32) {
    %c0_i32 = arith.constant 0 : i32
    %c0_i32_0 = arith.constant 0 : i32
    %c0_i32_1 = arith.constant 0 : i32
    return %c0_i32, %c0_i32_0 : i32, i32
  }
  func.func @transform_10(%arg0: i32, %arg1: i32) -> (i32, i32) {
    %c0_i32 = arith.constant 0 : i32
    %c0_i32_0 = arith.constant 0 : i32
    %c0_i32_1 = arith.constant 0 : i32
    return %c0_i32, %c0_i32_0 : i32, i32
  }
  func.func @transform_11(%arg0: i32, %arg1: i32) -> (i32, i32, i32, i32) {
    %c0_i32 = arith.constant 0 : i32
    %c0_i32_0 = arith.constant 0 : i32
    %c0_i32_1 = arith.constant 0 : i32
    return %arg1, %arg0, %c0_i32, %c0_i32_0 : i32, i32, i32, i32
  }
  func.func @transform_12(%arg0: i32, %arg1: i32) -> (i32, i32, i32, i32) {
    %c0_i32 = arith.constant 0 : i32
    %c0_i32_0 = arith.constant 0 : i32
    %c0_i32_1 = arith.constant 0 : i32
    return %arg1, %arg0, %c0_i32, %c0_i32_0 : i32, i32, i32, i32
  }
}

</mosaic_0001>

<bundles_post_ra>
// kernel: tpu_custom_call.1
= control target key start
LH: loop header
LB: loop body
LE: loop exit
PB: predicated region body
PF: predicated region fallthrough
CT: control target
= control target key end

     0   :  { %s2905_s0 = inlined_call_operand.<no memory space> [shape: f32[1], index: 0, kind: input, shape index: {}]   ;;  %s2906_s1 = inlined_call_operand.hbm [shape: f32[2,16,16], index: 1, kind: input, shape index: {}]   ;;  %s2907_s2 = inlined_call_operand.hbm [shape: f32[2,16,16], index: 2, kind: input, shape index: {}]   ;;  %s2908_s3 = inlined_call_operand.hbm [shape: f32[4,16,16], index: 3, kind: input, shape index: {}]   ;;  %s2909_s4 = inlined_call_operand.hbm [shape: f32[4,16,16], index: 4, kind: input, shape index: {}]   ;;  %s2910_s5 = inlined_call_operand.hbm [shape: f32[4,16,128], index: 5, kind: input, shape index: {}]   ;;  %s2911_s6 = inlined_call_operand.hbm [shape: f32[4,16,128], index: 6, kind: input, shape index: {}]   ;;  %s2912_s7 = inlined_call_operand.hbm [shape: f32[16,128], index: 7, kind: input, shape index: {}]   ;;  %s2913_s8 = inlined_call_operand.hbm [shape: f32[16,128], index: 8, kind: input, shape index: {}]   ;;  %s2914_s9 = inlined_call_operand.hbm [shape: f32[16,16], index: 9, kind: input, shape index: {}]   ;;  %s2915_s10 = inlined_call_operand.hbm [shape: f32[16,16], index: 10, kind: input, shape index: {}]   ;;  %s2916_s11 = inlined_call_operand.hbm [shape: f32[2,4,16,128], index: 11, kind: output, shape index: {0}]   ;;  %s2917_s12 = inlined_call_operand.hbm [shape: f32[2,4,16,128], index: 12, kind: output, shape index: {1}]  }
   0x1   :  { %2926 = sst [smem:[#allocation37_spill]] %s2908_s3 }
   0x2   :  { %2927 = sst [smem:[#allocation38_spill]] %s2909_s4 }
   0x3   :  { %2928 = sst [smem:[#allocation39_spill]] %s2910_s5 }
   0x4   :  { %2929 = sst [smem:[#allocation40_spill]] %s2911_s6 }
   0x5   :  { %2930 = sst [smem:[#allocation41_spill]] %s2912_s7 }
   0x6   :  { %2931 = sst [smem:[#allocation42_spill]] %s2913_s8 }
   0x7   :  { %2932 = sst [smem:[#allocation43_spill]] %s2914_s9 }
   0x8   :  { %2933 = sst [smem:[#allocation44_spill]] %s2915_s10 }
   0x9   :  { %2934 = sst [smem:[#allocation45_spill]] %s2916_s11 }
   0xa   :  { %2935 = sst [smem:[#allocation46_spill]] %s2917_s12 }
   0xb   :  { %18 = sst [smem:[#allocation4]] %s2905_s0 }
   0xc   :  { %19 = vsyncpa [#allocation6], 0 }
   0xd   :  { %21 = vsyncpa [#allocation6 + $0x1], 0 }
   0xe   :  { %22 = vsyncpa [#allocation9], 0 }
   0xf   :  { %24 = vsyncpa [#allocation9 + $0x1], 0 }
  0x10   :  { %25 = vsyncpa [#allocation12], 0 }
  0x11   :  { %26 = vsyncpa [#allocation15], 0 }
  0x12   :  { %27 = vsyncpa [#allocation18], 0 }
  0x13   :  { %28 = vsyncpa [#allocation21], 0 }
  0x14   :  { %29 = vsyncpa [#allocation7], 0 }
  0x15   :  { %31 = vsyncpa [#allocation7 + $0x1], 0 }
  0x16   :  { %32 = vsyncpa [#allocation24], 0 }
  0x17   :  { %34 = vsyncpa [#allocation24 + $0x1], 0  ;;  %s2473_s23 = smov 0   ;;  %s2475_s24 = smov 0  }
  0x18   :  { %s2477_s25 = smov 0   ;;  %s2479_s26 = smov 0  }
  0x19   :  { %s2481_s0 = smov 0   ;;  %s2483_s27 = smov 0  }
  0x1a LB: > { %2936 = sst [smem:[#allocation34_spill]] %s2387_s0  ;;  %s2504_s28 = sadd.s32 4294967295, %s2391_s27   ;;  %s2391_s27 = sphi %s2483_s27, %s40_s27   ;;  %s2387_s0 = sphi %s2481_s0, %s2959_s0   ;;  %s2383_s26 = sphi %s2479_s26, %s2958_s26   ;;  %s2379_s25 = sphi %s2477_s25, %s2962_s25   ;;  %s2375_s24 = sphi %s2475_s24, %s2961_s24   ;;  %s2371_s23 = sphi %s2473_s23, %s2960_s23  }
  0x1b   : > { %p1695_p0 = scmp.ge.s32.totalorder %s2391_s27, 1  ;;  %p94_p1 = scmp.eq.s32.totalorder %s2504_s28, 0 }
  0x1c   : > { %p374_p2 = scmp.lt.s32.totalorder %s2391_s27, 3  ;;  %s2937_s3 = sld [smem:[#allocation37_spill]] }
  0x1d   : > { %s2393_s15 = smov [#allocation10]   ;;  %p1704_p6 = scmp.ge.s32.totalorder %s2391_s27, 2 }
  0x1e   : > { %p2512_p3 = pnand %p1695_p0, %p374_p2  ;;  %s394_s16 = sshll.u32 %s2393_s15, 4  ;;  %s395_s16 = int_to_ptr.vmem [resolvable:$true] %s394_s16 }
  0x1f   : > { %s2940_s4 = sld [smem:[#allocation38_spill]]  ;;  %s2920_s21 = smov 128  }
  0x20   : > { %p1836_p4 = pneg %p2512_p3  ;;  %s2922_s22 = smov 8  }
  0x21   : > { %s2396_s29 = smov [#allocation11]   ;;  %s2941_s6 = sld [smem:[#allocation40_spill]] }
  0x22   : > { %s392_s13 = sshll.u32 %s2937_s3, 4  ;;  %p2520_p5 = pnand %p1836_p4, %p94_p1  ;;  %s393_s13 = int_to_ptr.hbm [resolvable:$true] %s392_s13 }
  0x23   : > { %s412_s30 = sshll.u32 %s2396_s29, 4  ;;  %s2942_s8 = sld [smem:[#allocation42_spill]]  ;;  %s413_s30 = int_to_ptr.vmem [resolvable:$true] %s412_s30 }
  0x24   : > { %1839 = dma.hbm_to_vmem [thread:$0]  (!%p2520_p5), %s393_s13, 1024, %s395_s16, [#allocation9], %s2920_s21, %s2920_s21, %s2922_s22  }
  0x25   : > { %s410_s20 = sshll.u32 %s2940_s4, 4  ;;  %s2397_s11 = smov [#allocation14]   ;;  %s411_s20 = int_to_ptr.hbm [resolvable:$true] %s410_s20 }
  0x26   : > { %1842 = dma.hbm_to_vmem [thread:$0]  (!%p2520_p5), %s411_s20, 1024, %s413_s30, [#allocation12], %s2920_s21, %s2920_s21, %s2922_s22  }
  0x27   : > { %s446_s12 = sshll.u32 %s2941_s6, 4  ;;  %s448_s13 = sshll.u32 %s2397_s11, 4  ;;  %s447_s12 = int_to_ptr.hbm [resolvable:$true] %s446_s12  ;;  %s449_s13 = int_to_ptr.vmem [resolvable:$true] %s448_s13 }
  0x28   : > { %1848 = dma.hbm_to_vmem [thread:$0]  (!%p2520_p5), %s447_s12, 1024, %s449_s13, [#allocation15], %s2920_s21, %s2920_s21, %s2922_s22  }
  0x29   : > { %s474_s4 = sshll.u32 %s2942_s8, 4  ;;  %s2398_s3 = smov [#allocation17]   ;;  %s475_s4 = int_to_ptr.hbm [resolvable:$true] %s474_s4 }
  0x2a   : > { %s476_s16 = sshll.u32 %s2398_s3, 4  ;;  %s2943_s5 = sld [smem:[#allocation39_spill]]  ;;  %s477_s16 = int_to_ptr.vmem [resolvable:$true] %s476_s16 }
  0x2b   : > { %1854 = dma.hbm_to_vmem [thread:$0]  (!%p2520_p5), %s475_s4, 256, %s477_s16, [#allocation18], %s2920_s21, %s2920_s21, %s2922_s22  }
  0x2c   : > { %s2944_s7 = sld [smem:[#allocation41_spill]]  ;;  %s2399_s19 = smov [#allocation13]  }
  0x2d   : > { %s430_s12 = sshll.u32 %s2399_s19, 4  ;;  %s2400_s13 = smov [#allocation16]   ;;  %s431_s12 = int_to_ptr.vmem [resolvable:$true] %s430_s12 }
  0x2e   : > { %s462_s3 = sshll.u32 %s2400_s13, 4  ;;  %s2945_s9 = sld [smem:[#allocation43_spill]]  ;;  %s463_s3 = int_to_ptr.vmem [resolvable:$true] %s462_s3 }
  0x2f   : > { %s2946_s10 = sld [smem:[#allocation44_spill]]  ;;  %s2401_s30 = smov [#allocation19]  }
  0x30   : > { %s428_s20 = sshll.u32 %s2943_s5, 4  ;;  %s490_s19 = sshll.u32 %s2401_s30, 4  ;;  %s429_s20 = int_to_ptr.hbm [resolvable:$true] %s428_s20  ;;  %s491_s19 = int_to_ptr.vmem [resolvable:$true] %s490_s19 }
  0x31   : > { %1845 = dma.hbm_to_vmem [thread:$0]  (!%p2520_p5), %s429_s20, 1024, %s431_s12, [#allocation12], %s2920_s21, %s2920_s21, %s2922_s22  }
  0x32   : > { %s460_s18 = sshll.u32 %s2944_s7, 4  ;;  %s2402_s12 = smov [#allocation20]   ;;  %s461_s18 = int_to_ptr.hbm [resolvable:$true] %s460_s18 }
  0x33   : > { %1851 = dma.hbm_to_vmem [thread:$0]  (!%p2520_p5), %s461_s18, 256, %s463_s3, [#allocation15], %s2920_s21, %s2920_s21, %s2922_s22  }
  0x34   : > { %s488_s16 = sshll.u32 %s2945_s9, 4  ;;  %s504_s18 = sshll.u32 %s2402_s12, 4  ;;  %s489_s16 = int_to_ptr.hbm [resolvable:$true] %s488_s16  ;;  %s505_s18 = int_to_ptr.vmem [resolvable:$true] %s504_s18 }
  0x35   : > { %s502_s11 = sshll.u32 %s2946_s10, 4  ;;  %s1694_s13 = sadd.s32 4294967294, %s2391_s27   ;;  %s503_s11 = int_to_ptr.hbm [resolvable:$true] %s502_s11 }
  0x36   : > { %1857 = dma.hbm_to_vmem [thread:$0]  (!%p2520_p5), %s489_s16, 256, %s491_s19, [#allocation18], %s2920_s21, %s2920_s21, %s2922_s22  }
  0x37   : > { %1860 = dma.hbm_to_vmem [thread:$0]  (!%p2520_p5), %s503_s11, 256, %s505_s18, [#allocation21], %s2920_s21, %s2920_s21, %s2922_s22  }
  0x38   : > { %s49_s3 = sadd.s32 1, %s2387_s0  ;;  %s80_s29 = sadd.s32 1, %s2379_s25 }
  0x39   : > { %p50_p7 = scmp.ge.s32.totalorder %s49_s3, 2  ;;  %p87_p8 = scmp.ne.s32.totalorder %s2379_s25, %s2375_s24 }
  0x3a   : > { %p88_p9 = scmp.eq.s32.totalorder %s2391_s27, 0  ;;  %p93_p11 = scmp.ne.s32.totalorder %s2375_s24, %s2371_s23 }
  0x3b   : > { %s2964_s3 = smov (%p50_p7, %s49_s3), 0  ;;  %p333_p12 = scmp.eq.s32.totalorder %s2504_s28, 1 }
  0x3c   : > { %2947 = sst [smem:[#allocation35_spill]] %s2964_s3  ;;  %p2594_p10 = por %p88_p9, %p87_p8 }
  0x3d   : > { %s77_s17 = ssub.s32 %s2387_s0, %s2964_s3  ;;  %p2605_p0 = por %p94_p1, %p93_p11 }
  0x3e   : > { %p78_p13 = scmp.eq.s32.totalorder %s77_s17, 0  ;;  %p2609_p2 = por %p333_p12, %p87_p8 }
  0x3f   : > { %p339_p4 = scmp.eq.s32.totalorder %s1694_s13, 1  ;;  %p1883_p7 = scmp.lt.s32.totalorder %s2391_s27, 2 }
  0x40   : > { %s2614_s20 = scalar_select %p78_p13, %s2379_s25, %s80_s29  }
  0x41   : > { %p2616_p5 = por %p339_p4, %p93_p11  ;;  %s518_s30 = sand.u32 1, %s2379_s25  }
  0x42   : > { %2951 = sst [smem:[#allocation36_spill]] %s2614_s20  ;;  %s1792_s19 = sshll.u32 %s2387_s0, 4 }
  0x43   : > { %s1705_s12 = sshll.u32 %s518_s30, 4  ;;  %s527_s21 = scalar_lea.hbm %s2906_s1, %s1792_s19 }
  0x44   : > { %s528_s22 = sshll.u32 %s527_s21, 4  ;;  %s522_s5 = scalar_lea.vmem [#allocation5], %s1705_s12  ;;  %s529_s22 = int_to_ptr.hbm [resolvable:$true] %s528_s22 }
  0x45   : > { %s530_s6 = sshll.u32 %s522_s5, 4  ;;  %p1862_p8 = pnand %p1883_p7, %p2594_p10  ;;  %s531_s6 = int_to_ptr.vmem [resolvable:$true] %s530_s6 }
  0x46   : > { %s549_s7 = scalar_lea.hbm %s2907_s2, %s1792_s19  ;;  %s544_s8 = scalar_lea.vmem [#allocation8], %s1705_s12 }
  0x47   : > { %s552_s9 = sshll.u32 %s544_s8, 4  ;;  %s550_s10 = sshll.u32 %s549_s7, 4  ;;  %s551_s10 = int_to_ptr.hbm [resolvable:$true] %s550_s10  ;;  %s553_s9 = int_to_ptr.vmem [resolvable:$true] %s552_s9 }
  0x48   : > { %s519_s3 = scalar_lea.sflag [#allocation6], %s518_s30  ;;  %s2953_s0 = smov 8  }
  0x49   : > { %s2954_s20 = smov 128   ;;  %s540_s21 = sand.u32 1, %s2391_s27  }
  0x4a   : > { %1864 = dma.hbm_to_vmem [thread:$0]  (!%p1862_p8), %s529_s22, 256, %s531_s6, %s519_s3, %s2954_s20, %s2954_s20, %s2953_s0  }
  0x4b   : > { %s541_s5 = scalar_lea.sflag [#allocation9], %s540_s21  ;;  %564 = sbr.rel (%p2512_p3) target bundleno = 477 (0x1dd), region = 64 }
  0x4c   : > { %1867 = dma.hbm_to_vmem [thread:$0]  (!%p1862_p8), %s551_s10, 256, %s553_s9, %s541_s5, %s2954_s20, %s2954_s20, %s2953_s0  }
  0x4d   : > { %s2641_s8 = sand.u32 (!%p2512_p3), 1, %s2375_s24  }
  0x4e   : > { %s1712_s7 = sshll.u32 (!%p2512_p3), %s2641_s8, 4  ;;  %s567_s4 = scalar_lea.sflag (!%p2512_p3), [#allocation6], %s2641_s8 }
  0x4f   : > { %s570_s6 = scalar_lea.vmem (!%p2512_p3), [#allocation5], %s1712_s7 }
  0x50   : > { %2334 = dma.done.wait (%p2605_p0), %s567_s4, 256  }
  0x51   : > { %2336 = vsyncadd (%p2605_p0), %s567_s4, 4294967040  ;;  %s576_s9 = sand.u32 1, %s2504_s28   ;;  %s2650_s0 = scalar_lea.vmem [#allocation8], %s1712_s7 }
  0x52   : > { %s577_s10 = scalar_lea.sflag [#allocation9], %s576_s9 }
  0x53   : > { %2338 = dma.done.wait (%p2605_p0), %s577_s10, 256  }
  0x54   : > { %2340 = vsyncadd (%p2605_p0), %s577_s10, 4294967040 }
  0x55   : > { %2342 = dma.done.wait (%p94_p1), [#allocation9], 1024  }
  0x56   : > { %2344 = vsyncadd (%p94_p1), [#allocation9], 4294966272 }
  0x57   : > { %2346 = dma.done.wait (%p94_p1), [#allocation12], 2048  }
  0x58   : > { %2348 = vsyncadd (%p94_p1), [#allocation12], 4294965248 }
  0x59   : > { %2350 = dma.done.wait (%p94_p1), [#allocation15], 1280  }
  0x5a   : > { %2352 = vsyncadd (%p94_p1), [#allocation15], 4294966016 }
  0x5b   : > { %2354 = dma.done.wait (%p94_p1), [#allocation18], 512  }
  0x5c   : > { %2356 = vsyncadd (%p94_p1), [#allocation18], 4294966784 }
  0x5d   : > { %2358 = dma.done.wait (%p94_p1), [#allocation21], 256  }
  0x5e   : > { %2360 = vsyncadd (%p94_p1), [#allocation21], 4294967040  ;;  %v747_v0 = vld [vmem:[#allocation16 + $0x8] sm:$0xff]  ;;  %v749_v1 = vld [vmem:[#allocation17 + $0x8] sm:$0xff]  ;;  %vm752_vm0 = vcmask 130048   ;;  %s1002_s28 = sld [smem:[#allocation4]] }
  0x5f   : > { %v746_v2 = vld [vmem:[#allocation16] sm:$0xff]  ;;  %791 = vmatpush.msra.mxu0 %v747_v0  ;;  %856 = vmatpush.msra.mxu1 %v749_v1  ;;  %v748_v3 = vld [vmem:[#allocation17] sm:$0xff]  ;;  %v751_v4 = vadd.f32 %v749_v1, %v747_v0  ;;  %v2681_v10 = vld [vmem:[%s570_s6 + $0x8] sm:$0xff]  ;;  %s1722_s14 = sshll.u32 %s2641_s8, 6  ;;  %s1794_s16 = sshll.u32 %s2383_s26, 6 }
  0x60   : > { %v2676_v5 = vld [vmem:[%s570_s6] sm:$0xff]  ;;  %v750_v9 = vadd.f32 %v748_v3, %v746_v2  ;;  %v2687_v14 = vld [vmem:[%s2650_s0 + $0x8] sm:$0xff]  ;;  %s2798_s22 = scalar_lea.vmem [#allocation22], %s1722_s14  ;;  %s2804_s3 = scalar_lea.vmem [#allocation23], %s1722_s14 }
  0x61   : > { %v2679_v6 = vld [vmem:[%s2650_s0] sm:$0xff]  ;;  %792 = vmatpush.msra.mxu0 %v746_v2  ;;  %857 = vmatpush.msra.mxu1 %v748_v3  ;;  %v683_v15 = vld [vmem:[#allocation10 + $0x8] sm:$0xff]  ;;  %v685_v36 = vld [vmem:[#allocation10 + $0x18] sm:$0xff]  ;;  %s2955_s19 = sld [smem:[#allocation45_spill]]  ;;  %s1443_s18 = sshll.u32 %s2798_s22, 4  ;;  %s1444_s18 = int_to_ptr.vmem [resolvable:$true] %s1443_s18 }
  0x62   : > { %v682_v7 = vld [vmem:[#allocation10] sm:$0xff]  ;;  %v691_v16 = vld [vmem:[#allocation11 + $0x8] sm:$0xff]  ;;  %929 = vmatpush.msra.mxu2 %v751_v4  ;;  %v699_v19 = vmul.f32 %v683_v15, %v2681_v10  ;;  %v723_v22 = vmul.f32 %v683_v15, %v2687_v14  ;;  %v684_v27 = vld [vmem:[#allocation10 + $0x10] sm:$0xff]  ;;  %v701_v38 = vmul.f32 %v685_v36, %v2681_v10  ;;  %v725_v41 = vmul.f32 %v685_v36, %v2687_v14  ;;  %s1423_s13 = scalar_lea.sflag [#allocation7], %s2641_s8 }
  0x63   : > { %v690_v8 = vld [vmem:[#allocation11] sm:$0xff]  ;;  %v698_v11 = vmul.f32 %v682_v7, %v2676_v5  ;;  %v722_v13 = vmul.f32 %v682_v7, %v2679_v6  ;;  %v707_v21 = vmul.f32 %v691_v16, %v2687_v14  ;;  %v731_v23 = vmul.f32 %v691_v16, %v2681_v10  ;;  %v692_v28 = vld [vmem:[#allocation11 + $0x10] sm:$0xff]  ;;  %v693_v37 = vld [vmem:[#allocation11 + $0x18] sm:$0xff] }
  0x64   : > { %v706_v12 = vmul.f32 %v690_v8, %v2679_v6  ;;  %v730_v17 = vmul.f32 %v690_v8, %v2676_v5  ;;  %930 = vmatpush.msra.mxu2 %v750_v9  ;;  %v700_v29 = vmul.f32 %v684_v27, %v2676_v5  ;;  %v708_v31 = vmul.f32 %v692_v28, %v2679_v6  ;;  %v686_v45 = vld [vmem:[#allocation10 + $0x20] sm:$0xff]  ;;  %v687_v54 = vld [vmem:[#allocation10 + $0x28] sm:$0xff]  ;;  %v688_v63 = vld [vmem:[#allocation10 + $0x30] sm:$0xff] }
  0x65   : > { %v715_v25 = vsub.f32 %v699_v19, %v707_v21  ;;  %v739_v26 = vadd.f32 %v731_v23, %v723_v22  ;;  %v724_v32 = vmul.f32 %v684_v27, %v2679_v6  ;;  %v732_v33 = vmul.f32 %v692_v28, %v2676_v5  ;;  %v694_v46 = vld [vmem:[#allocation11 + $0x20] sm:$0xff]  ;;  %v695_v55 = vld [vmem:[#allocation11 + $0x28] sm:$0xff]  ;;  %v696_v0 = vld [vmem:[#allocation11 + $0x30] sm:$0xff] }
  0x66   : > { %v714_v18 = vsub.f32 %v698_v11, %v706_v12  ;;  %v738_v20 = vadd.f32 %v730_v17, %v722_v13  ;;  %v716_v34 = vsub.f32 %v700_v29, %v708_v31  ;;  %v709_v40 = vmul.f32 %v693_v37, %v2687_v14  ;;  %v689_v11 = vld [vmem:[#allocation10 + $0x38] sm:$0xff] }
  0x67   : > { %v884_v30 = vadd.f32 %v739_v26, %v715_v25  ;;  %v740_v35 = vadd.f32 %v732_v33, %v724_v32  ;;  %v733_v42 = vmul.f32 %v693_v37, %v2681_v10  ;;  %v702_v47 = vmul.f32 %v686_v45, %v2676_v5  ;;  %v697_v12 = vld [vmem:[#allocation11 + $0x38] sm:$0xff]  ;;  %v2746_v32 = vld [vmem:[#allocation19 + $0x8] sm:$0xff]  ;;  %s1442_s12 = scalar_lea.hbm %s2955_s19, %s1794_s16  ;;  %s2273_s4 = scalar_lea.hbm %s2955_s19, 128 }
  0x68   : > { %1724 = vmatmul.msk.f32.vlgmr.msra.gmra.mxu0 %vm752_vm0, %v714_v18  ;;  %1732 = vmatmul.msk.f32.vlgmr.msra.gmra.mxu1 %vm752_vm0, %v738_v20  ;;  %v883_v24 = vadd.f32 %v738_v20, %v714_v18  ;;  %v717_v43 = vsub.f32 %v701_v38, %v709_v40  ;;  %v710_v49 = vmul.f32 %v694_v46, %v2679_v6  ;;  %v2750_v40 = vld [vmem:[#allocation20] sm:$0xff]  ;;  %s1445_s17 = sshll.u32 %s1442_s12, 4  ;;  %s1446_s17 = int_to_ptr.hbm [resolvable:$true] %s1445_s17 }
  0x69   : > { %v885_v39 = vadd.f32 %v740_v35, %v716_v34  ;;  %v741_v44 = vadd.f32 %v733_v42, %v725_v41  ;;  %v726_v50 = vmul.f32 %v686_v45, %v2679_v6  ;;  %v734_v51 = vmul.f32 %v694_v46, %v2676_v5  ;;  %s2267_s29 = sshra.s32 %s1446_s17, 4  ;;  %s2268_s29 = int_to_ptr.hbm [resolvable:$true] %s2267_s29 }
  0x6a   : > { %1740 = vmatmul.msk.f32.vlgmr.msra.gmra.mxu2 %vm752_vm0, %v883_v24  ;;  %v718_v52 = vsub.f32 %v702_v47, %v710_v49  ;;  %v703_v56 = vmul.f32 %v687_v54, %v2681_v10  ;;  %v711_v58 = vmul.f32 %v695_v55, %v2687_v14  ;;  %v727_v59 = vmul.f32 %v687_v54, %v2687_v14  ;;  %v2754_v49 = vld [vmem:[#allocation20 + $0x8] sm:$0xff]  ;;  %s2269_s21 = scalar_lea.hbm %s2268_s29, 64  ;;  %p2274_p10 = scmp.lt.s32.totalorder %s2268_s29, %s2955_s19 }
  0x6b   : > { %v886_v48 = vadd.f32 %v741_v44, %v717_v43  ;;  %v742_v53 = vadd.f32 %v734_v51, %v726_v50  ;;  %v735_v60 = vmul.f32 %v695_v55, %v2681_v10  ;;  %v704_v1 = vmul.f32 %v688_v63, %v2676_v5  ;;  %p2270_p1 = scmp.ne.s32.totalorder %s2268_s29, %s2269_s21  ;;  %p2275_p11 = scmp.lt.s32.totalorder %s2273_s4, %s2269_s21 }
  0x6c   : > { %v719_v61 = vsub.f32 %v703_v56, %v711_v58  ;;  %v712_v2 = vmul.f32 %v696_v0, %v2679_v6  ;;  %v728_v3 = vmul.f32 %v688_v63, %v2679_v6  ;;  %v736_v4 = vmul.f32 %v696_v0, %v2676_v5 }
  0x6d   : > { %v887_v57 = vadd.f32 %v742_v53, %v718_v52  ;;  %v743_v62 = vadd.f32 %v735_v60, %v727_v59  ;;  %v705_v15 = vmul.f32 %v689_v11, %v2681_v10  ;;  %v713_v16 = vmul.f32 %v697_v12, %v2687_v14  ;;  %p2271_p3 = pnand %p2270_p1, %p2609_p2  ;;  %p2276_p12 = por %p2275_p11, %p2274_p10 }
  0x6e   : > { %v720_v8 = vsub.f32 %v704_v1, %v712_v2  ;;  %v744_v9 = vadd.f32 %v736_v4, %v728_v3  ;;  %v729_v6 = vmul.f32 %v689_v11, %v2687_v14  ;;  %v737_v5 = vmul.f32 %v697_v12, %v2681_v10 }
  0x6f   : > { %v888_v7 = vadd.f32 %v743_v62, %v719_v61  ;;  %v721_v17 = vsub.f32 %v705_v15, %v713_v16  ;;  %p2272_p9 = pneg %p2271_p3 }
  0x70   : > { %1725 = vmatmul.msk.f32.gmra.mxu0 %vm752_vm0, %v715_v25  ;;  %1733 = vmatmul.msk.f32.gmra.mxu1 %vm752_vm0, %v739_v26  ;;  %v889_v13 = vadd.f32 %v744_v9, %v720_v8  ;;  %v745_v18 = vadd.f32 %v737_v5, %v729_v6  ;;  %v2742_v25 = vld [vmem:[#allocation19] sm:$0xff] }
  0x71   : > { %v1000_v55 = vadd.f32 %v2750_v40, %v2742_v25  ;;  %p2277_p13 = pnand %p2276_p12, %p2272_p9 }
  0x72   : > { %1741 = vmatmul.msk.f32.gmra.mxu2 %vm752_vm0, %v884_v30  ;;  %v890_v19 = vadd.f32 %v745_v18, %v721_v17 }
  0x78   : > { %1726 = vmatmul.msk.f32.gmra.mxu0 %vm752_vm0, %v716_v34  ;;  %1734 = vmatmul.msk.f32.gmra.mxu1 %vm752_vm0, %v740_v35 }
  0x7a   : > { %1742 = vmatmul.msk.f32.gmra.mxu2 %vm752_vm0, %v885_v39 }
  0x80   : > { %1727 = vmatmul.msk.f32.gmra.mxu0 %vm752_vm0, %v717_v43  ;;  %1735 = vmatmul.msk.f32.gmra.mxu1 %vm752_vm0, %v741_v44 }
  0x82   : > { %1743 = vmatmul.msk.f32.gmra.mxu2 %vm752_vm0, %v886_v48 }
  0x88   : > { %1728 = vmatmul.msk.f32.gmra.mxu0 %vm752_vm0, %v718_v52  ;;  %1736 = vmatmul.msk.f32.gmra.mxu1 %vm752_vm0, %v742_v53 }
  0x8a   : > { %1744 = vmatmul.msk.f32.gmra.mxu2 %vm752_vm0, %v887_v57 }
  0x90   : > { %1729 = vmatmul.msk.f32.gmra.mxu0 %vm752_vm0, %v719_v61  ;;  %1737 = vmatmul.msk.f32.gmra.mxu1 %vm752_vm0, %v743_v62  ;;  %v1001_v61 = vadd.f32 %v2754_v49, %v2746_v32 }
  0x92   : > { %1745 = vmatmul.msk.f32.gmra.mxu2 %vm752_vm0, %v888_v7 }
  0x98   : > { %1730 = vmatmul.msk.f32.gmra.mxu0 %vm752_vm0, %v720_v8  ;;  %1738 = vmatmul.msk.f32.gmra.mxu1 %vm752_vm0, %v744_v9 }
  0x9a   : > { %1746 = vmatmul.msk.f32.gmra.mxu2 %vm752_vm0, %v889_v13 }
  0xa0   : > { %1731 = vmatmul.msk.f32.gmra.mxu0 %vm752_vm0, %v721_v17  ;;  %1739 = vmatmul.msk.f32.gmra.mxu1 %vm752_vm0, %v745_v18 }
  0xa2   : > { %1747 = vmatmul.msk.f32.gmra.mxu2 %vm752_vm0, %v890_v19 }
  0xe5   : > { %v794_v20 = vpop.f32.mrf.mxu0  ;;  %v859_v21 = vpop.f32.mrf.mxu1 }
  0xe6   : > { %v956_v24 = vsub.f32 %v794_v20, %v859_v21 }
  0xed   : > { %v797_v14 = vpop.f32.mrf.mxu0  ;;  %v862_v22 = vpop.f32.mrf.mxu1 }
  0xee   : > { %v932_v10 = vpop.f32.mrf.mxu2  ;;  %v957_v23 = vsub.f32 %v797_v14, %v862_v22 }
  0xef   : > { %v972_v27 = vsub.f32 %v932_v10, %v794_v20  ;;  %v1098_v20 = vld [vmem:[#allocation13] sm:$0xff] }
  0xf0   : > { %1027 = vmatpush.msra.mxu3 %v957_v23 }
  0xf1   : > { %v980_v33 = vsub.f32 %v972_v27, %v859_v21  ;;  %v2794_v21 = vstv %s1002_s28 }
  0xf2   : > { %1028 = vmatpush.msra.mxu3 %v956_v24 }
  0xf3   : > { %1748 = vmatmul.msk.f32.vlgmr.msra.gmra.mxu3 %vm752_vm0, %v2742_v25  ;;  %v1065_v36 = vadd.f32 %v980_v33, %v956_v24  ;;  %v1099_v24 = vld [vmem:[#allocation13 + $0x8] sm:$0xff] }
  0xf5   : > { %v800_v26 = vpop.f32.mrf.mxu0  ;;  %v865_v28 = vpop.f32.mrf.mxu1 }
  0xf6   : > { %v935_v29 = vpop.f32.mrf.mxu2  ;;  %v958_v41 = vsub.f32 %v800_v26, %v865_v28 }
  0xf7   : > { %v973_v30 = vsub.f32 %v935_v29, %v797_v14  ;;  %v1101_v14 = vmul.f32 %v2794_v21, %v1098_v20  ;;  %v1111_v29 = vld [vmem:[#allocation14] sm:$0xff] }
  0xf9   : > { %v981_v31 = vsub.f32 %v973_v30, %v862_v22 }
  0xfb   : > { %1056 = vmatpush.msrb.mxu3 %v981_v31  ;;  %v1066_v34 = vadd.f32 %v981_v31, %v957_v23 }
  0xfc   : > { %1749 = vmatmul.msk.f32.gmra.mxu3 %vm752_vm0, %v2746_v32 }
  0xfd   : > { %1057 = vmatpush.msrb.mxu3 %v980_v33  ;;  %v803_v35 = vpop.f32.mrf.mxu0  ;;  %v868_v37 = vpop.f32.mrf.mxu1 }
  0xfe   : > { %v938_v38 = vpop.f32.mrf.mxu2  ;;  %v959_v39 = vsub.f32 %v803_v35, %v868_v37 }
  0xff   : > { %1087 = vmatpush.msra.mxu3 %v1066_v34  ;;  %v974_v42 = vsub.f32 %v938_v38, %v800_v26 }
 0x101   : > { %1088 = vmatpush.msra.mxu3 %v1065_v36  ;;  %v982_v47 = vsub.f32 %v974_v42, %v865_v28 }
 0x103   : > { %v1169_v51 = vadd.f32 %v982_v47, %v958_v41 }
 0x104   : > { %1750 = vmatmul.msk.f32.vlgmr.msrb.gmra.mxu3 %vm752_vm0, %v2750_v40 }
 0x105   : > { %1137 = vmatpush.msrb.mxu3 %v959_v39  ;;  %v806_v43 = vpop.f32.mrf.mxu0  ;;  %v871_v44 = vpop.f32.mrf.mxu1 }
 0x106   : > { %v941_v45 = vpop.f32.mrf.mxu2  ;;  %v960_v57 = vsub.f32 %v806_v43, %v871_v44 }
 0x107   : > { %v975_v46 = vsub.f32 %v941_v45, %v803_v35  ;;  %1138 = vmatpush.msrb.mxu3 %v958_v41  ;;  %v1211_v45 = vld [vmem:[#allocation14 + $0x10] sm:$0xff] }
 0x109   : > { %v983_v48 = vsub.f32 %v975_v46, %v868_v37  ;;  %v1112_v37 = vld [vmem:[#allocation14 + $0x8] sm:$0xff] }
 0x10a   : > { %v1114_v41 = vmul.f32 %v1112_v37, %v2794_v21 }
 0x10b   : > { %1160 = vmatpush.msrb.mxu0 %v983_v48  ;;  %v1170_v50 = vadd.f32 %v983_v48, %v959_v39 }
 0x10c   : > { %1751 = vmatmul.msk.f32.gmra.mxu3 %vm752_vm0, %v2754_v49 }
 0x10d   : > { %1161 = vmatpush.msrb.mxu0 %v982_v47  ;;  %1185 = vmatpush.msrb.mxu1 %v1170_v50  ;;  %v809_v52 = vpop.f32.mrf.mxu0  ;;  %v874_v53 = vpop.f32.mrf.mxu1 }
 0x10e   : > { %v944_v54 = vpop.f32.mrf.mxu2  ;;  %1756 = vmatmul.msk.f32.vlgmr.msrb.gmra.mxu0 %vm752_vm0, %v2750_v40  ;;  %v961_v56 = vsub.f32 %v809_v52, %v874_v53 }
 0x10f   : > { %1186 = vmatpush.msrb.mxu1 %v1169_v51  ;;  %v976_v58 = vsub.f32 %v944_v54, %v806_v43  ;;  %v1197_v43 = vld [vmem:[#allocation13 + $0x10] sm:$0xff] }
 0x110   : > { %1758 = vmatmul.msk.f32.vlgmr.msrb.gmra.mxu1 %vm752_vm0, %v1000_v55  ;;  %1238 = vmatpush.msrb.mxu2 %v961_v56  ;;  %v1199_v48 = vmul.f32 %v1197_v43, %v2794_v21 }
 0x111   : > { %v984_v63 = vsub.f32 %v976_v58, %v871_v44  ;;  %v1212_v58 = vld [vmem:[#allocation14 + $0x18] sm:$0xff] }
 0x112   : > { %1239 = vmatpush.msrb.mxu2 %v960_v57 }
 0x113   : > { %1764 = vmatmul.msk.f32.vlgmr.msrb.gmra.mxu2 %vm752_vm0, %v2742_v25  ;;  %v1270_v2 = vadd.f32 %v984_v63, %v960_v57 }
 0x114   : > { %1752 = vmatmul.msk.f32.vlgmr.msra.gmra.mxu3 %vm752_vm0, %v1000_v55 }
 0x115   : > { %v812_v59 = vpop.f32.mrf.mxu0  ;;  %v877_v62 = vpop.f32.mrf.mxu1 }
 0x116   : > { %v947_v60 = vpop.f32.mrf.mxu2  ;;  %1757 = vmatmul.msk.f32.gmra.mxu0 %vm752_vm0, %v2754_v49  ;;  %v962_v9 = vsub.f32 %v812_v59, %v877_v62 }
 0x117   : > { %v977_v0 = vsub.f32 %v947_v60, %v809_v52  ;;  %v1213_v52 = vmul.f32 %v1211_v45, %v2794_v21  ;;  %v1399_v60 = vld [vmem:[#allocation13 + $0x30] sm:$0xff] }
 0x118   : > { %1759 = vmatmul.msk.f32.gmra.mxu1 %vm752_vm0, %v1001_v61 }
 0x119   : > { %v985_v1 = vsub.f32 %v977_v0, %v874_v53 }
 0x11b   : > { %v1271_v3 = vadd.f32 %v985_v1, %v961_v56  ;;  %1261 = vmatpush.msra.mxu3 %v985_v1  ;;  %1765 = vmatmul.msk.f32.gmra.mxu2 %vm752_vm0, %v2746_v32  ;;  %v1198_v56 = vld [vmem:[#allocation13 + $0x18] sm:$0xff] }
 0x11c   : > { %1753 = vmatmul.msk.f32.gmra.mxu3 %vm752_vm0, %v1001_v61 }
 0x11d   : > { %1262 = vmatpush.msra.mxu3 %v984_v63  ;;  %1286 = vmatpush.msra.mxu0 %v1271_v3  ;;  %v815_v4 = vpop.f32.mrf.mxu0  ;;  %v880_v8 = vpop.f32.mrf.mxu1  ;;  %v1401_v3 = vmul.f32 %v1399_v60, %v2794_v21 }
 0x11e   : > { %v950_v7 = vpop.f32.mrf.mxu2  ;;  %v963_v11 = vsub.f32 %v815_v4, %v880_v8 }
 0x11f   : > { %1287 = vmatpush.msra.mxu0 %v1270_v2  ;;  %v978_v12 = vsub.f32 %v950_v7, %v812_v59  ;;  %v1214_v2 = vmul.f32 %v1212_v58, %v2794_v21 }
 0x120   : > { %1768 = vmatmul.msk.f32.vlgmr.msra.gmra.mxu0 %vm752_vm0, %v1000_v55  ;;  %1339 = vmatpush.msra.mxu1 %v963_v11 }
 0x121   : > { %v986_v15 = vsub.f32 %v978_v12, %v877_v62  ;;  %v1312_v12 = vld [vmem:[#allocation14 + $0x20] sm:$0xff] }
 0x122   : > { %1340 = vmatpush.msra.mxu1 %v962_v9 }
 0x123   : > { %1774 = vmatmul.msk.f32.vlgmr.msra.gmra.mxu1 %vm752_vm0, %v2742_v25  ;;  %v1371_v5 = vadd.f32 %v986_v15, %v962_v9 }
 0x124   : > { %1754 = vmatmul.msk.f32.vlgmr.msrb.gmra.mxu3 %vm752_vm0, %v2742_v25  ;;  %v1102_v25 = vmul.f32 %v2794_v21, %v1099_v24 }
 0x126   : > { %v953_v13 = vpop.f32.mrf.mxu2 }
 0x127   : > { %v979_v16 = vsub.f32 %v953_v13, %v815_v4 }
 0x128   : > { %1769 = vmatmul.msk.f32.gmra.mxu0 %vm752_vm0, %v1001_v61 }
 0x129   : > { %v987_v6 = vsub.f32 %v979_v16, %v880_v8 }
 0x12b   : > { %v1372_v17 = vadd.f32 %v987_v6, %v963_v11  ;;  %1362 = vmatpush.msra.mxu2 %v987_v6  ;;  %1775 = vmatmul.msk.f32.gmra.mxu1 %vm752_vm0, %v2746_v32  ;;  %v1298_v11 = vld [vmem:[#allocation13 + $0x20] sm:$0xff]  ;;  %v1400_v6 = vld [vmem:[#allocation13 + $0x38] sm:$0xff] }
 0x12c   : > { %1755 = vmatmul.msk.f32.gmra.mxu3 %vm752_vm0, %v2746_v32  ;;  %v1113_v32 = vmul.f32 %v1111_v29, %v2794_v21 }
 0x12d   : > { %1387 = vmatpush.msrb.mxu3 %v1372_v17  ;;  %1363 = vmatpush.msra.mxu2 %v986_v15  ;;  %v1314_v17 = vmul.f32 %v1312_v12, %v2794_v21 }
 0x12e   : > { %1776 = vmatmul.msk.f32.vlgmr.msra.gmra.mxu2 %vm752_vm0, %v2750_v40 }
 0x12f   : > { %1388 = vmatpush.msrb.mxu3 %v1371_v5  ;;  %v1300_v5 = vmul.f32 %v1298_v11, %v2794_v21 }
 0x134   : > { %1766 = vmatmul.msk.f32.vlgmr.msra.gmra.mxu3 %vm752_vm0, %v2750_v40 }
 0x136   : > { %1777 = vmatmul.msk.f32.gmra.mxu2 %vm752_vm0, %v2754_v49 }
 0x13c   : > { %1767 = vmatmul.msk.f32.gmra.mxu3 %vm752_vm0, %v2754_v49 }
 0x144   : > { %1778 = vmatmul.msk.f32.vlgmr.msrb.gmra.mxu3 %vm752_vm0, %v1000_v55 }
 0x14c   : > { %1779 = vmatmul.msk.f32.gmra.mxu3 %vm752_vm0, %v1001_v61  ;;  %v1200_v61 = vmul.f32 %v1198_v56, %v2794_v21 }
 0x176   : > { %v1030_v18 = vpop.f32.mrf.mxu3 }
 0x17f   : > { %v1033_v19 = vpop.f32.mrf.mxu3 }
 0x187   : > { %v1059_v22 = vpop.f32.mrf.mxu3 }
 0x188   : > { %v1096_v10 = vsub.f32 %v1030_v18, %v1059_v22 }
 0x18a   : > { %v1103_v23 = vadd.f32 %v1101_v14, %v1096_v10 }
 0x18b   : > { %v1163_v34 = vpop.f32.mrf.mxu0 }
 0x18c   : > { %1105 = vst [vmem:[%s2798_s22] sm:$0xff] %v1103_v23 }
 0x18d   : > { %v1188_v35 = vpop.f32.mrf.mxu1 }
 0x18f   : > { %v1062_v26 = vpop.f32.mrf.mxu3 }
 0x190   : > { %v1097_v27 = vsub.f32 %v1033_v19, %v1062_v26 }
 0x192   : > { %v1104_v28 = vadd.f32 %v1102_v25, %v1097_v27  ;;  %v1299_v27 = vld [vmem:[#allocation13 + $0x28] sm:$0xff] }
 0x193   : > { %v1166_v46 = vpop.f32.mrf.mxu0 }
 0x194   : > { %1106 = vst [vmem:[%s2798_s22 + $0x8] sm:$0xff] %v1104_v28  ;;  %v1313_v28 = vld [vmem:[#allocation14 + $0x28] sm:$0xff] }
 0x195   : > { %v1191_v47 = vpop.f32.mrf.mxu1 }
 0x196   : > { %v1241_v39 = vpop.f32.mrf.mxu2 }
 0x197   : > { %v1090_v30 = vpop.f32.mrf.mxu3 }
 0x198   : > { %v1107_v31 = vsub.f32 %v1090_v30, %v1030_v18 }
 0x19a   : > { %v1109_v33 = vsub.f32 %v1107_v31, %v1059_v22  ;;  %v1402_v22 = vmul.f32 %v1400_v6, %v2794_v21  ;;  %v1301_v31 = vmul.f32 %v1299_v27, %v2794_v21 }
 0x19c   : > { %v1115_v36 = vadd.f32 %v1113_v32, %v1109_v33  ;;  %v1315_v32 = vmul.f32 %v1313_v28, %v2794_v21 }
 0x19d   : > { %v1289_v63 = vpop.f32.mrf.mxu0 }
 0x19e   : > { %1117 = vst [vmem:[%s2804_s3] sm:$0xff] %v1115_v36  ;;  %v1244_v53 = vpop.f32.mrf.mxu2  ;;  %v1307_v15 = vsub.f32 %v1289_v63, %v1241_v39 }
 0x19f   : > { %v1093_v38 = vpop.f32.mrf.mxu3 }
 0x1a0   : > { %v1108_v40 = vsub.f32 %v1093_v38, %v1033_v19  ;;  %v2812_v59 = vpop.f32.mrf.mxu1  ;;  %v1413_v38 = vld [vmem:[#allocation14 + $0x30] sm:$0xff] }
 0x1a2   : > { %v1110_v42 = vsub.f32 %v1108_v40, %v1062_v26 }
 0x1a4   : > { %v1116_v44 = vadd.f32 %v1114_v41, %v1110_v42 }
 0x1a5   : > { %v1292_v10 = vpop.f32.mrf.mxu0 }
 0x1a6   : > { %1118 = vst [vmem:[%s2804_s3 + $0x8] sm:$0xff] %v1116_v44  ;;  %v1308_v29 = vsub.f32 %v1292_v10, %v1244_v53 }
 0x1a7   : > { %v1140_v49 = vpop.f32.mrf.mxu3 }
 0x1a8   : > { %v1194_v50 = vsub.f32 %v1140_v49, %v1163_v34  ;;  %v1206_v51 = vsub.f32 %v1188_v35, %v1140_v49  ;;  %v1345_v19 = vpop.f32.mrf.mxu1 }
 0x1aa   : > { %v1201_v54 = vadd.f32 %v1199_v48, %v1194_v50  ;;  %v1208_v55 = vsub.f32 %v1206_v51, %v1163_v34 }
 0x1ac   : > { %1760 = vst [vmem:[%s2798_s22 + $0x10] sm:$0xff] %v1201_v54  ;;  %v1215_v57 = vadd.f32 %v1213_v52, %v1208_v55 }
 0x1ae   : > { %1762 = vst [vmem:[%s2804_s3 + $0x10] sm:$0xff] %v1215_v57 }
 0x1af   : > { %v1143_v62 = vpop.f32.mrf.mxu3 }
 0x1b0   : > { %v1195_v0 = vsub.f32 %v1143_v62, %v1166_v46  ;;  %v1207_v1 = vsub.f32 %v1191_v47, %v1143_v62 }
 0x1b1   : > { %v2818_v4 = vpop.f32.mrf.mxu2 }
 0x1b2   : > { %v1202_v7 = vadd.f32 %v1200_v61, %v1195_v0  ;;  %v1209_v8 = vsub.f32 %v1207_v1, %v1166_v46  ;;  %v1396_v9 = vsub.f32 %v2812_v59, %v2818_v4 }
 0x1b4   : > { %1761 = vst [vmem:[%s2798_s22 + $0x18] sm:$0xff] %v1202_v7  ;;  %v1216_v13 = vadd.f32 %v1214_v2, %v1209_v8  ;;  %v1403_v16 = vadd.f32 %v1401_v3, %v1396_v9 }
 0x1b6   : > { %1763 = vst [vmem:[%s2804_s3 + $0x18] sm:$0xff] %v1216_v13 }
 0x1b7   : > { %v1264_v18 = vpop.f32.mrf.mxu3  ;;  %1780 = vst [vmem:[%s2798_s22 + $0x30] sm:$0xff] %v1403_v16 }
 0x1b8   : > { %v1295_v20 = vsub.f32 %v1241_v39, %v1264_v18  ;;  %v1309_v14 = vsub.f32 %v1307_v15, %v1264_v18 }
 0x1b9   : > { %v1368_v23 = vpop.f32.mrf.mxu2 }
 0x1ba   : > { %v1302_v24 = vadd.f32 %v1300_v5, %v1295_v20  ;;  %v1316_v25 = vadd.f32 %v1314_v17, %v1309_v14  ;;  %v1397_v26 = vsub.f32 %v1345_v19, %v1368_v23 }
 0x1bc   : > { %1770 = vst [vmem:[%s2798_s22 + $0x20] sm:$0xff] %v1302_v24  ;;  %v1404_v30 = vadd.f32 %v1402_v22, %v1397_v26 }
 0x1bd   : > { %1772 = vst [vmem:[%s2804_s3 + $0x20] sm:$0xff] %v1316_v25 }
 0x1be   : > { %1781 = vst [vmem:[%s2798_s22 + $0x38] sm:$0xff] %v1404_v30 }
 0x1bf   : > { %v1267_v33 = vpop.f32.mrf.mxu3 }
 0x1c0   : > { %v1296_v34 = vsub.f32 %v1244_v53, %v1267_v33  ;;  %v1310_v35 = vsub.f32 %v1308_v29, %v1267_v33 }
 0x1c2   : > { %v1303_v36 = vadd.f32 %v1301_v31, %v1296_v34  ;;  %v1317_v37 = vadd.f32 %v1315_v32, %v1310_v35 }
 0x1c4   : > { %1771 = vst [vmem:[%s2798_s22 + $0x28] sm:$0xff] %v1303_v36 }
 0x1c5   : > { %1773 = vst [vmem:[%s2804_s3 + $0x28] sm:$0xff] %v1317_v37 }
 0x1c6   : > { %2280 = shalt.err (!%p2277_p13)
}
 0x1c7   : > { %s2403_s10 = smov 128   ;;  %s2404_s0 = smov 8   ;;  %v1390_v39 = vpop.f32.mrf.mxu3  ;;  %v1415_v41 = vmul.f32 %v1413_v38, %v2794_v21  ;;  %v1414_v44 = vld [vmem:[#allocation14 + $0x38] sm:$0xff] }
 0x1c8   : > { %1832 = dma.vmem_to_hbm [thread:$0]  (%p2609_p2), %s1444_s18, 1024, %s1446_s17, %s1423_s13, %s2403_s10, %s2403_s10, %s2404_s0   ;;  %v1408_v40 = vsub.f32 %v1390_v39, %v2812_v59  ;;  %v1416_v47 = vmul.f32 %v1414_v44, %v2794_v21 }
 0x1c9   : > { %s2956_s22 = sld [smem:[#allocation46_spill]]  ;;  %s1463_s30 = sshll.u32 %s2804_s3, 4  ;;  %s1464_s30 = int_to_ptr.vmem [resolvable:$true] %s1463_s30 }
 0x1ca   : > { %v1410_v42 = vsub.f32 %v1408_v40, %v2818_v4  ;;  %s1428_s18 = scalar_lea.sflag [#allocation24], %s2641_s8 }
 0x1cc   : > { %v1417_v43 = vadd.f32 %v1415_v41, %v1410_v42 }
 0x1ce   : > { %1782 = vst [vmem:[%s2804_s3 + $0x30] sm:$0xff] %v1417_v43 }
 0x1cf   : > { %s1462_s20 = scalar_lea.hbm %s2956_s22, %s1794_s16  ;;  %v1393_v45 = vpop.f32.mrf.mxu3  ;;  %s2301_s29 = scalar_lea.hbm %s2956_s22, 128 }
 0x1d0   : > { %v1409_v46 = vsub.f32 %v1393_v45, %v1345_v19  ;;  %s1465_s12 = sshll.u32 %s1462_s20, 4  ;;  %s1466_s12 = int_to_ptr.hbm [resolvable:$true] %s1465_s12 }
 0x1d1   : > { %s2295_s17 = sshra.s32 %s1466_s12, 4  ;;  %s2296_s17 = int_to_ptr.hbm [resolvable:$true] %s2295_s17 }
 0x1d2   : > { %v1411_v48 = vsub.f32 %v1409_v46, %v1368_v23  ;;  %s2297_s26 = scalar_lea.hbm %s2296_s17, 64  ;;  %p2302_p8 = scmp.lt.s32.totalorder %s2296_s17, %s2956_s22 }
 0x1d3   : > { %p2298_p0 = scmp.ne.s32.totalorder %s2296_s17, %s2297_s26  ;;  %p2303_p1 = scmp.lt.s32.totalorder %s2301_s29, %s2297_s26 }
 0x1d4   : > { %v1418_v49 = vadd.f32 %v1416_v47, %v1411_v48 }
 0x1d5   : > { %p2299_p4 = pnand %p2298_p0, %p2609_p2  ;;  %p2304_p3 = por %p2303_p1, %p2302_p8 }
 0x1d6   : > { %1783 = vst [vmem:[%s2804_s3 + $0x38] sm:$0xff] %v1418_v49 }
 0x1d7   : > { %p2300_p7 = pneg %p2299_p4 }
 0x1d9   : > { %p2305_p9 = pnand %p2304_p3, %p2300_p7 }
 0x1db   : > { %2308 = shalt.err (!%p2305_p9)
}
 0x1dc   : > { %1833 = dma.vmem_to_hbm [thread:$0]  (%p2609_p2), %s1464_s30, 1024, %s1466_s12, %s1428_s18, %s2403_s10, %s2403_s10, %s2404_s0  }
 0x1dd PF: > { %s1480_s8 = sand.u32 1, %s2371_s23   ;;  %p1869_p10 = pnand %p1704_p6, %p2616_p5 }
 0x1de   : > { %s1481_s3 = scalar_lea.sflag [#allocation7], %s1480_s8 }
 0x1df   : > { %p1870_p11 = pneg %p1869_p10 }
 0x1e1   : > { %2362 = dma.done.wait (%p1870_p11), %s1481_s3, 1024  }
 0x1e2   : > { %2364 = vsyncadd (%p1870_p11), %s1481_s3, 4294966272  ;;  %s1491_s7 = scalar_lea.sflag [#allocation24], %s1480_s8 }
 0x1e3   : > { %2366 = dma.done.wait (%p1870_p11), %s1491_s7, 1024  }
 0x1e4   : > { %2368 = vsyncadd (%p1870_p11), %s1491_s7, 4294966272  ;;  %s40_s27 = sadd.s32 1, %s2391_s27   ;;  %s2957_s15 = sld [smem:[#allocation36_spill]] }
 0x1e5   : > { %p37_p12 = scmp.ge.s32.totalorder %s40_s27, 4   ;;  %s2958_s26 = sld [smem:[#allocation34_spill]] }
 0x1e6   : > { %s2959_s0 = sld [smem:[#allocation35_spill]]  ;;  %s2960_s23 = smov %s2375_s24 }
 0x1e7   : > { %s2961_s24 = smov %s2379_s25  ;;  %39 = sbr.rel (!%p37_p12) target bundleno = 26 (0x1a), region = 187 }
 0x1ea   : > { %s2962_s25 = smov %s2957_s15 }
 0x1ec   :  { %1497 = vsyncpa [#allocation6], 1 }
 0x1ed   :  { %1499 = vsyncpa [#allocation6 + $0x1], 1 }
 0x1ee   :  { %1500 = vsyncpa [#allocation9], 1 }
 0x1ef   :  { %1502 = vsyncpa [#allocation9 + $0x1], 1 }
 0x1f0   :  { %1503 = vsyncpa [#allocation12], 1 }
 0x1f1   :  { %1504 = vsyncpa [#allocation15], 1 }
 0x1f2   :  { %1505 = vsyncpa [#allocation18], 1 }
 0x1f3   :  { %1506 = vsyncpa [#allocation21], 1 }
 0x1f4   :  { %1507 = vsyncpa [#allocation7], 1 }
 0x1f5   :  { %1509 = vsyncpa [#allocation7 + $0x1], 1 }
 0x1f6   :  { %1510 = vsyncpa [#allocation24], 1 }
 0x1f7   :  { %1512 = vsyncpa [#allocation24 + $0x1], 1 }

</bundles_post_ra>
